<compile_context>
chip_gen: v7x
topology: tpu7x:2x2x1
jax: 0.10.0
libtpu: 0.0.40
codegen_flags: <defaults>
</compile_context>

<pallas_src>
import functools

import jax
import jax.numpy as jnp
from jax.experimental import pallas as pl
from jax.experimental.pallas import tpu as pltpu

IN_DIM = 28 * 28   # 784
HID = 400
LAT = 20
HID_P = 512        # hidden padded to a multiple of 128 (and of 256 for v6e/v7x MXU)
LAT_P = 128        # latent padded to one full lane group -> lane-dense outputs


def _round_up(n, m):
    return ((n + m - 1) // m) * m


def _vae_kernel(x_ref, eps_ref,
                w_enc_ref, b_enc_ref,
                w_heads_ref, b_heads_ref,
                w_d1_ref, b_d1_ref,
                w_d2_ref, b_d2_ref,
                xhat_ref, zmean_ref, logvar_ref):
    # encoder: (TB, 784)bf16 @ (784, 512)bf16 -> f32 acc, bias + ReLU in f32
    h = jnp.dot(x_ref[...], w_enc_ref[...], preferred_element_type=jnp.float32)
    h = jnp.maximum(h + b_enc_ref[...], 0.0)                       # (TB, 512) f32

    # fused z_mean / log_var heads: one (512, 256) matmul, lane-split at 128
    zz = jnp.dot(h.astype(jnp.bfloat16), w_heads_ref[...],
                 preferred_element_type=jnp.float32) + b_heads_ref[...]
    half = zz.shape[-1] // 2
    z_mean = zz[:, :half]                                          # (TB, 128)
    log_var = zz[:, half:]                                         # (TB, 128)

    # reparameterization: z = mean + exp(log_var / 2) * eps
    # (padded lanes: mean = log_var = 0, eps = 0  ->  z = 0)
    z = z_mean + jnp.exp(log_var * 0.5) * eps_ref[...]             # (TB, 128) f32

    # decoder: Linear(128p, 512p) + ReLU, Linear(512p, 784) + Sigmoid
    d = jnp.dot(z.astype(jnp.bfloat16), w_d1_ref[...],
                preferred_element_type=jnp.float32)
    d = jnp.maximum(d + b_d1_ref[...], 0.0)                        # (TB, 512) f32
    logits = jnp.dot(d.astype(jnp.bfloat16), w_d2_ref[...],
                     preferred_element_type=jnp.float32) + b_d2_ref[...]

    # sigmoid: exp and approx reciprocal both issue on the (otherwise idle) EUP slot
    x_hat = pl.reciprocal(1.0 + jnp.exp(-logits), approx=True)
    x_hat = jnp.clip(x_hat, 0.0, 1.0)                              # exact [0, 1] like torch

    xhat_ref[...] = x_hat
    zmean_ref[...] = z_mean
    logvar_ref[...] = log_var


def init_params(key, input_dim=IN_DIM, hidden=HID, latent=LAT):
    """Deterministic synthetic weights, PyTorch-equivalent layout: Linear as (in, out)."""
    ks = jax.random.split(key, 10)

    def lin(kw, kb, fan_in, fan_out):
        bound = 1.0 / jnp.sqrt(fan_in)
        w = jax.random.uniform(kw, (fan_in, fan_out), jnp.float32, -bound, bound)
        b = jax.random.uniform(kb, (1, fan_out), jnp.float32, -bound, bound)
        return w, b

    w_enc, b_enc = lin(ks[0], ks[1], input_dim, hidden)
    w_mu, b_mu = lin(ks[2], ks[3], hidden, latent)
    w_lv, b_lv = lin(ks[4], ks[5], hidden, latent)
    w_d1, b_d1 = lin(ks[6], ks[7], latent, hidden)
    w_d2, b_d2 = lin(ks[8], ks[9], hidden, input_dim)
    return dict(w_enc=w_enc, b_enc=b_enc, w_mu=w_mu, b_mu=b_mu, w_lv=w_lv, b_lv=b_lv,
                w_d1=w_d1, b_d1=b_d1, w_d2=w_d2, b_d2=b_d2)


def prepare_params(params):
    """Zero-pad (400->512 hidden, 20->128 latent), fuse mu/log_var heads, cast matmul
    weights to bf16 (biases stay f32). Done once; reused across forward calls."""
    def pad2(a, rows, cols):
        return jnp.pad(a, ((0, rows - a.shape[0]), (0, cols - a.shape[1])))

    bf = jnp.bfloat16
    w_enc = pad2(params["w_enc"], IN_DIM, HID_P)               # (784, 512)
    b_enc = pad2(params["b_enc"], 1, HID_P)                    # (1, 512)

    w_heads = jnp.concatenate(
        [pad2(params["w_mu"], HID_P, LAT_P),
         pad2(params["w_lv"], HID_P, LAT_P)], axis=1)          # (512, 256)
    b_heads = jnp.concatenate(
        [pad2(params["b_mu"], 1, LAT_P),
         pad2(params["b_lv"], 1, LAT_P)], axis=1)              # (1, 256)

    w_d1 = pad2(params["w_d1"], LAT_P, HID_P)                  # (128, 512)
    b_d1 = pad2(params["b_d1"], 1, HID_P)                      # (1, 512)
    w_d2 = pad2(params["w_d2"], HID_P, IN_DIM)                 # (512, 784)
    b_d2 = params["b_d2"]                                      # (1, 784)

    return dict(
        w_enc=w_enc.astype(bf), b_enc=b_enc.astype(jnp.float32),
        w_heads=w_heads.astype(bf), b_heads=b_heads.astype(jnp.float32),
        w_d1=w_d1.astype(bf), b_d1=b_d1.astype(jnp.float32),
        w_d2=w_d2.astype(bf), b_d2=b_d2.astype(jnp.float32),
    )


@functools.partial(jax.jit, static_argnames=("tb_max",))
def vae_forward(x, eps, kparams, tb_max=512):
    """x: (B, 1, 28, 28) or (B, 28, 28); eps: (B, 20). Returns (x_hat, z_mean, log_var)."""
    B = x.shape[0]
    x_flat = x.reshape(B, IN_DIM)                              # same element order as .view

    # Pad batch to a multiple of 16 (bf16 sublane pack) and to a multiple of the tile.
    B16 = _round_up(max(B, 16), 16)
    TB = min(tb_max, B16)
    B_pad = _round_up(B16, TB)

    x_p = jnp.pad(x_flat.astype(jnp.bfloat16), ((0, B_pad - B), (0, 0)))
    eps_p = jnp.pad(eps.astype(jnp.float32), ((0, B_pad - B), (0, LAT_P - LAT)))

    def row_spec(dim):
        return pl.BlockSpec((TB, dim), lambda i: (i, 0))

    def resident(arr):
        return pl.BlockSpec(arr.shape, lambda i: (0, 0))       # stays in VMEM, no re-DMA

    in_specs = [
        row_spec(IN_DIM),                                      # x tile
        row_spec(LAT_P),                                       # eps tile
        resident(kparams["w_enc"]), resident(kparams["b_enc"]),
        resident(kparams["w_heads"]), resident(kparams["b_heads"]),
        resident(kparams["w_d1"]), resident(kparams["b_d1"]),
        resident(kparams["w_d2"]), resident(kparams["b_d2"]),
    ]
    out_specs = (row_spec(IN_DIM), row_spec(LAT_P), row_spec(LAT_P))
    out_shapes = (
        jax.ShapeDtypeStruct((B_pad, IN_DIM), jnp.float32),    # x_hat
        jax.ShapeDtypeStruct((B_pad, LAT_P), jnp.float32),     # z_mean (padded)
        jax.ShapeDtypeStruct((B_pad, LAT_P), jnp.float32),     # log_var (padded)
    )

    x_hat, z_mean, log_var = pl.pallas_call(
        _vae_kernel,
        out_shape=out_shapes,
        grid=(B_pad // TB,),
        in_specs=in_specs,
        out_specs=out_specs,
        compiler_params=pltpu.CompilerParams(
            dimension_semantics=("parallel",),
            vmem_limit_bytes=48 << 20,
        ),
    )(x_p, eps_p,
      kparams["w_enc"], kparams["b_enc"],
      kparams["w_heads"], kparams["b_heads"],
      kparams["w_d1"], kparams["b_d1"],
      kparams["w_d2"], kparams["b_d2"])

    return x_hat[:B], z_mean[:B, :LAT], log_var[:B, :LAT]


def vae_reference(x, eps, params):
    """Pure-JAX f32 reference matching the PyTorch module."""
    B = x.shape[0]
    xf = x.reshape(B, IN_DIM).astype(jnp.float32)
    h = jnp.maximum(xf @ params["w_enc"] + params["b_enc"], 0.0)
    z_mean = h @ params["w_mu"] + params["b_mu"]
    log_var = h @ params["w_lv"] + params["b_lv"]
    z = z_mean + jnp.exp(0.5 * log_var) * eps
    d = jnp.maximum(z @ params["w_d1"] + params["b_d1"], 0.0)
    logits = d @ params["w_d2"] + params["b_d2"]
    return jax.nn.sigmoid(logits), z_mean, log_var


if __name__ == "__main__":
    key = jax.random.PRNGKey(0)
    k_param, k_x, k_eps = jax.random.split(key, 3)

    B = 2
    params = init_params(k_param)
    kparams = prepare_params(params)

    # NCHW-style MNIST-shaped input in [0, 1]; eps is the reparam-trick noise
    # (deterministic stand-in for torch.randn_like).
    x = jax.random.uniform(k_x, (B, 1, 28, 28), jnp.float32)
    eps = jax.random.normal(k_eps, (B, LAT), jnp.float32)

    x_hat, z_mean, log_var = vae_forward(x, eps, kparams)
    jax.block_until_ready((x_hat, z_mean, log_var))

    assert x_hat.shape == (B, IN_DIM)
    assert z_mean.shape == (B, LAT)
    assert log_var.shape == (B, LAT)
    assert bool(jnp.all(jnp.isfinite(x_hat)))
    assert bool(jnp.all((x_hat >= 0.0) & (x_hat <= 1.0)))

    # bf16-operand / f32-accumulate path vs f32 reference (loose tolerance)
    xr, zr, lr = vae_reference(x, eps, params)
    assert bool(jnp.max(jnp.abs(x_hat - xr)) < 3e-2)
    assert bool(jnp.max(jnp.abs(z_mean - zr)) < 3e-2)
    assert bool(jnp.max(jnp.abs(log_var - lr)) < 3e-2)

    print("KERNEL_OK")
</pallas_src>

<mosaic_0001>
module attributes {stable_mosaic.version = 11 : i64} {
  func.func @_vae_kernel(%arg0: i32, %arg1: memref<16x784xbf16, #tpu.memory_space<vmem>>, %arg2: memref<16x128xf32, #tpu.memory_space<vmem>>, %arg3: memref<784x512xbf16, #tpu.memory_space<vmem>>, %arg4: memref<1x512xf32, #tpu.memory_space<vmem>>, %arg5: memref<512x256xbf16, #tpu.memory_space<vmem>>, %arg6: memref<1x256xf32, #tpu.memory_space<vmem>>, %arg7: memref<128x512xbf16, #tpu.memory_space<vmem>>, %arg8: memref<1x512xf32, #tpu.memory_space<vmem>>, %arg9: memref<512x784xbf16, #tpu.memory_space<vmem>>, %arg10: memref<1x784xf32, #tpu.memory_space<vmem>>, %arg11: memref<16x784xf32, #tpu.memory_space<vmem>>, %arg12: memref<16x128xf32, #tpu.memory_space<vmem>>, %arg13: memref<16x128xf32, #tpu.memory_space<vmem>>) attributes {dimension_semantics = [#tpu.dimension_semantics<parallel>], iteration_bounds = array<i64: 1>, scalar_prefetch = 0 : i64, scratch_operands = 0 : i64, tpu.core_type = #tpu.core_type<tc>, window_params = [{transform_indices = @transform_0, window_bounds = array<i64: 16, 784>}, {transform_indices = @transform_1, window_bounds = array<i64: 16, 128>}, {pipeline_mode = #tpu.pipeline_mode<synchronous>, transform_indices = @transform_2, window_bounds = array<i64: 784, 512>}, {pipeline_mode = #tpu.pipeline_mode<synchronous>, transform_indices = @transform_3, window_bounds = array<i64: 1, 512>}, {pipeline_mode = #tpu.pipeline_mode<synchronous>, transform_indices = @transform_4, window_bounds = array<i64: 512, 256>}, {pipeline_mode = #tpu.pipeline_mode<synchronous>, transform_indices = @transform_5, window_bounds = array<i64: 1, 256>}, {pipeline_mode = #tpu.pipeline_mode<synchronous>, transform_indices = @transform_6, window_bounds = array<i64: 128, 512>}, {pipeline_mode = #tpu.pipeline_mode<synchronous>, transform_indices = @transform_7, window_bounds = array<i64: 1, 512>}, {pipeline_mode = #tpu.pipeline_mode<synchronous>, transform_indices = @transform_8, window_bounds = array<i64: 512, 784>}, {pipeline_mode = #tpu.pipeline_mode<synchronous>, transform_indices = @transform_9, window_bounds = array<i64: 1, 784>}, {transform_indices = @transform_10, window_bounds = array<i64: 16, 784>}, {transform_indices = @transform_11, window_bounds = array<i64: 16, 128>}, {transform_indices = @transform_12, window_bounds = array<i64: 16, 128>}]} {
    %c0 = arith.constant 0 : index
    %c0_0 = arith.constant 0 : index
    %0 = vector.load %arg1[%c0, %c0_0] : memref<16x784xbf16, #tpu.memory_space<vmem>>, vector<16x784xbf16>
    %c0_1 = arith.constant 0 : index
    %c0_2 = arith.constant 0 : index
    %1 = vector.load %arg3[%c0_1, %c0_2] : memref<784x512xbf16, #tpu.memory_space<vmem>>, vector<784x512xbf16>
    %cst = arith.constant dense<0.000000e+00> : vector<16x512xf32>
    %2 = tpu.matmul %0, %1, %cst {dimension_numbers = #tpu.dot_dimension_numbers<[1], [0], [0], [1], [0, 0, 1, 1], [], []>} : vector<16x784xbf16>, vector<784x512xbf16>, vector<16x512xf32> -> vector<16x512xf32>
    %c0_3 = arith.constant 0 : index
    %c0_4 = arith.constant 0 : index
    %3 = vector.load %arg4[%c0_3, %c0_4] : memref<1x512xf32, #tpu.memory_space<vmem>>, vector<1x512xf32>
    %4 = vector.broadcast %3 : vector<1x512xf32> to vector<16x512xf32>
    %5 = arith.addf %2, %4 : vector<16x512xf32>
    %cst_5 = arith.constant 0.000000e+00 : f32
    %6 = vector.broadcast %cst_5 : f32 to vector<16x512xf32>
    %7 = arith.maximumf %5, %6 : vector<16x512xf32>
    %8 = arith.truncf %7 : vector<16x512xf32> to vector<16x512xbf16>
    %c0_6 = arith.constant 0 : index
    %c0_7 = arith.constant 0 : index
    %9 = vector.load %arg5[%c0_6, %c0_7] : memref<512x256xbf16, #tpu.memory_space<vmem>>, vector<512x256xbf16>
    %cst_8 = arith.constant dense<0.000000e+00> : vector<16x256xf32>
    %10 = tpu.matmul %8, %9, %cst_8 {dimension_numbers = #tpu.dot_dimension_numbers<[1], [0], [0], [1], [0, 0, 1, 1], [], []>} : vector<16x512xbf16>, vector<512x256xbf16>, vector<16x256xf32> -> vector<16x256xf32>
    %c0_9 = arith.constant 0 : index
    %c0_10 = arith.constant 0 : index
    %11 = vector.load %arg6[%c0_9, %c0_10] : memref<1x256xf32, #tpu.memory_space<vmem>>, vector<1x256xf32>
    %12 = vector.broadcast %11 : vector<1x256xf32> to vector<16x256xf32>
    %13 = arith.addf %10, %12 : vector<16x256xf32>
    %14 = vector.extract_strided_slice %13 {offsets = [0, 0], sizes = [16, 128], strides = [1, 1]} : vector<16x256xf32> to vector<16x128xf32>
    %15 = vector.extract_strided_slice %13 {offsets = [0, 128], sizes = [16, 128], strides = [1, 1]} : vector<16x256xf32> to vector<16x128xf32>
    %cst_11 = arith.constant 5.000000e-01 : f32
    %16 = vector.broadcast %cst_11 : f32 to vector<16x128xf32>
    %17 = arith.mulf %15, %16 : vector<16x128xf32>
    %18 = math.exp %17 : vector<16x128xf32>
    %c0_12 = arith.constant 0 : index
    %c0_13 = arith.constant 0 : index
    %19 = vector.load %arg2[%c0_12, %c0_13] : memref<16x128xf32, #tpu.memory_space<vmem>>, vector<16x128xf32>
    %20 = arith.mulf %18, %19 : vector<16x128xf32>
    %21 = arith.addf %14, %20 : vector<16x128xf32>
    %22 = arith.truncf %21 : vector<16x128xf32> to vector<16x128xbf16>
    %c0_14 = arith.constant 0 : index
    %c0_15 = arith.constant 0 : index
    %23 = vector.load %arg7[%c0_14, %c0_15] : memref<128x512xbf16, #tpu.memory_space<vmem>>, vector<128x512xbf16>
    %cst_16 = arith.constant dense<0.000000e+00> : vector<16x512xf32>
    %24 = tpu.matmul %22, %23, %cst_16 {dimension_numbers = #tpu.dot_dimension_numbers<[1], [0], [0], [1], [0, 0, 1, 1], [], []>} : vector<16x128xbf16>, vector<128x512xbf16>, vector<16x512xf32> -> vector<16x512xf32>
    %c0_17 = arith.constant 0 : index
    %c0_18 = arith.constant 0 : index
    %25 = vector.load %arg8[%c0_17, %c0_18] : memref<1x512xf32, #tpu.memory_space<vmem>>, vector<1x512xf32>
    %26 = vector.broadcast %25 : vector<1x512xf32> to vector<16x512xf32>
    %27 = arith.addf %24, %26 : vector<16x512xf32>
    %cst_19 = arith.constant 0.000000e+00 : f32
    %28 = vector.broadcast %cst_19 : f32 to vector<16x512xf32>
    %29 = arith.maximumf %27, %28 : vector<16x512xf32>
    %30 = arith.truncf %29 : vector<16x512xf32> to vector<16x512xbf16>
    %c0_20 = arith.constant 0 : index
    %c0_21 = arith.constant 0 : index
    %31 = vector.load %arg9[%c0_20, %c0_21] : memref<512x784xbf16, #tpu.memory_space<vmem>>, vector<512x784xbf16>
    %cst_22 = arith.constant dense<0.000000e+00> : vector<16x784xf32>
    %32 = tpu.matmul %30, %31, %cst_22 {dimension_numbers = #tpu.dot_dimension_numbers<[1], [0], [0], [1], [0, 0, 1, 1], [], []>} : vector<16x512xbf16>, vector<512x784xbf16>, vector<16x784xf32> -> vector<16x784xf32>
    %c0_23 = arith.constant 0 : index
    %c0_24 = arith.constant 0 : index
    %33 = vector.load %arg10[%c0_23, %c0_24] : memref<1x784xf32, #tpu.memory_space<vmem>>, vector<1x784xf32>
    %34 = vector.broadcast %33 : vector<1x784xf32> to vector<16x784xf32>
    %35 = arith.addf %32, %34 : vector<16x784xf32>
    %cst_25 = arith.constant 0.000000e+00 : f32
    %36 = vector.broadcast %cst_25 : f32 to vector<16x784xf32>
    %37 = arith.subf %36, %35 : vector<16x784xf32>
    %38 = math.exp %37 : vector<16x784xf32>
    %cst_26 = arith.constant 1.000000e+00 : f32
    %39 = vector.broadcast %cst_26 : f32 to vector<16x784xf32>
    %40 = arith.addf %39, %38 : vector<16x784xf32>
    %41 = tpu.reciprocal %40 {approx = true} : vector<16x784xf32> -> vector<16x784xf32>
    %cst_27 = arith.constant 0.000000e+00 : f32
    %cst_28 = arith.constant 1.000000e+00 : f32
    %42 = vector.broadcast %cst_27 : f32 to vector<16x784xf32>
    %43 = arith.maximumf %42, %41 : vector<16x784xf32>
    %44 = vector.broadcast %cst_28 : f32 to vector<16x784xf32>
    %45 = arith.minimumf %44, %43 : vector<16x784xf32>
    %c0_29 = arith.constant 0 : index
    %c0_30 = arith.constant 0 : index
    %46 = vector.load %arg11[%c0_29, %c0_30] : memref<16x784xf32, #tpu.memory_space<vmem>>, vector<16x784xf32>
    tpu.vector_store %arg11[%c0_29, %c0_30], %45 {strides = array<i32>} : memref<16x784xf32, #tpu.memory_space<vmem>>, vector<16x784xf32>,
    %c0_31 = arith.constant 0 : index
    %c0_32 = arith.constant 0 : index
    %47 = vector.load %arg12[%c0_31, %c0_32] : memref<16x128xf32, #tpu.memory_space<vmem>>, vector<16x128xf32>
    tpu.vector_store %arg12[%c0_31, %c0_32], %14 {strides = array<i32>} : memref<16x128xf32, #tpu.memory_space<vmem>>, vector<16x128xf32>,
    %c0_33 = arith.constant 0 : index
    %c0_34 = arith.constant 0 : index
    %48 = vector.load %arg13[%c0_33, %c0_34] : memref<16x128xf32, #tpu.memory_space<vmem>>, vector<16x128xf32>
    tpu.vector_store %arg13[%c0_33, %c0_34], %15 {strides = array<i32>} : memref<16x128xf32, #tpu.memory_space<vmem>>, vector<16x128xf32>,
    return
  }
  func.func @transform_0(%arg0: i32) -> (i32, i32) {
    %c0_i32 = arith.constant 0 : i32
    %c0_i32_0 = arith.constant 0 : i32
    return %arg0, %c0_i32 : i32, i32
  }
  func.func @transform_1(%arg0: i32) -> (i32, i32) {
    %c0_i32 = arith.constant 0 : i32
    %c0_i32_0 = arith.constant 0 : i32
    return %arg0, %c0_i32 : i32, i32
  }
  func.func @transform_2(%arg0: i32) -> (i32, i32) {
    %c0_i32 = arith.constant 0 : i32
    %c0_i32_0 = arith.constant 0 : i32
    %c0_i32_1 = arith.constant 0 : i32
    return %c0_i32, %c0_i32_0 : i32, i32
  }
  func.func @transform_3(%arg0: i32) -> (i32, i32) {
    %c0_i32 = arith.constant 0 : i32
    %c0_i32_0 = arith.constant 0 : i32
    %c0_i32_1 = arith.constant 0 : i32
    return %c0_i32, %c0_i32_0 : i32, i32
  }
  func.func @transform_4(%arg0: i32) -> (i32, i32) {
    %c0_i32 = arith.constant 0 : i32
    %c0_i32_0 = arith.constant 0 : i32
    %c0_i32_1 = arith.constant 0 : i32
    return %c0_i32, %c0_i32_0 : i32, i32
  }
  func.func @transform_5(%arg0: i32) -> (i32, i32) {
    %c0_i32 = arith.constant 0 : i32
    %c0_i32_0 = arith.constant 0 : i32
    %c0_i32_1 = arith.constant 0 : i32
    return %c0_i32, %c0_i32_0 : i32, i32
  }
  func.func @transform_6(%arg0: i32) -> (i32, i32) {
    %c0_i32 = arith.constant 0 : i32
    %c0_i32_0 = arith.constant 0 : i32
    %c0_i32_1 = arith.constant 0 : i32
    return %c0_i32, %c0_i32_0 : i32, i32
  }
  func.func @transform_7(%arg0: i32) -> (i32, i32) {
    %c0_i32 = arith.constant 0 : i32
    %c0_i32_0 = arith.constant 0 : i32
    %c0_i32_1 = arith.constant 0 : i32
    return %c0_i32, %c0_i32_0 : i32, i32
  }
  func.func @transform_8(%arg0: i32) -> (i32, i32) {
    %c0_i32 = arith.constant 0 : i32
    %c0_i32_0 = arith.constant 0 : i32
    %c0_i32_1 = arith.constant 0 : i32
    return %c0_i32, %c0_i32_0 : i32, i32
  }
  func.func @transform_9(%arg0: i32) -> (i32, i32) {
    %c0_i32 = arith.constant 0 : i32
    %c0_i32_0 = arith.constant 0 : i32
    %c0_i32_1 = arith.constant 0 : i32
    return %c0_i32, %c0_i32_0 : i32, i32
  }
  func.func @transform_10(%arg0: i32) -> (i32, i32) {
    %c0_i32 = arith.constant 0 : i32
    %c0_i32_0 = arith.constant 0 : i32
    return %arg0, %c0_i32 : i32, i32
  }
  func.func @transform_11(%arg0: i32) -> (i32, i32) {
    %c0_i32 = arith.constant 0 : i32
    %c0_i32_0 = arith.constant 0 : i32
    return %arg0, %c0_i32 : i32, i32
  }
  func.func @transform_12(%arg0: i32) -> (i32, i32) {
    %c0_i32 = arith.constant 0 : i32
    %c0_i32_0 = arith.constant 0 : i32
    return %arg0, %c0_i32 : i32, i32
  }
}

</mosaic_0001>

<bundles_post_ra>
// kernel: vae_forward.1
= control target key start
LH: loop header
LB: loop body
LE: loop exit
PB: predicated region body
PF: predicated region fallthrough
CT: control target
= control target key end

     0   :  { %vm1280_vm0 = vcmask 130048   ;;  %s7610_s2 = inlined_call_operand.vmem [shape: bf16[784,512], index: 2, kind: input, shape index: {}]   ;;  %s7611_s0 = inlined_call_operand.vmem [shape: bf16[16,784], index: 0, kind: input, shape index: {}]   ;;  %s7612_s4 = inlined_call_operand.vmem [shape: bf16[512,256], index: 4, kind: input, shape index: {}]   ;;  %s7613_s6 = inlined_call_operand.vmem [shape: bf16[128,512], index: 6, kind: input, shape index: {}]   ;;  %s7614_s3 = inlined_call_operand.vmem [shape: f32[1,512], index: 3, kind: input, shape index: {}]   ;;  %s7615_s8 = inlined_call_operand.vmem [shape: bf16[512,784], index: 8, kind: input, shape index: {}]   ;;  %s7616_s5 = inlined_call_operand.vmem [shape: f32[1,256], index: 5, kind: input, shape index: {}]   ;;  %s7617_s11 = inlined_call_operand.vmem [shape: f32[16,128], index: 11, kind: output, shape index: {1}]   ;;  %s7618_s12 = inlined_call_operand.vmem [shape: f32[16,128], index: 12, kind: output, shape index: {2}]   ;;  %s7619_s1 = inlined_call_operand.vmem [shape: f32[16,128], index: 1, kind: input, shape index: {}]   ;;  %s7620_s7 = inlined_call_operand.vmem [shape: f32[1,512], index: 7, kind: input, shape index: {}]   ;;  %s7621_s9 = inlined_call_operand.vmem [shape: f32[1,784], index: 9, kind: input, shape index: {}]   ;;  %s7622_s10 = inlined_call_operand.vmem [shape: f32[16,784], index: 10, kind: output, shape index: {0}]  }
   0x1   :  { %v4994_v0 = vld [vmem:[%s7610_s2 + $0x4] ss:$16 sps:$4 sm:$0xff]   ;;  %v4996_v1 = vld [vmem:[%s7610_s2 + $0xc] ss:$16 sps:$4 sm:$0xff]   ;;  %v4998_v2 = vld [vmem:[%s7610_s2] ss:$16 sps:$4 sm:$0xff]  }
   0x2   :  { %1284 = vmatprep.subr.bf16.mxu0 %v4994_v0  ;;  %v4999_v3 = vld [vmem:[%s7610_s2 + $0x8] ss:$16 sps:$4 sm:$0xff]   ;;  %1456 = vmatprep.subr.bf16.mxu1 %v4996_v1  ;;  %v5000_v4 = vld [vmem:[%s7610_s2 + $0x24] ss:$16 sps:$4 sm:$0xff]   ;;  %v5002_v5 = vld [vmem:[%s7610_s2 + $0x2c] ss:$16 sps:$4 sm:$0xff]  }
   0x3   :  { %1285 = vmatpush1.bf16.msra.mxu0 %v4998_v2  ;;  %1457 = vmatpush1.bf16.msra.mxu1 %v4999_v3  ;;  %v5004_v6 = vld [vmem:[%s7610_s2 + $0x20] ss:$16 sps:$4 sm:$0xff]   ;;  %v5005_v7 = vld [vmem:[%s7610_s2 + $0x28] ss:$16 sps:$4 sm:$0xff]   ;;  %v5006_v8 = vld [vmem:[%s7610_s2 + $0x44] ss:$16 sps:$4 sm:$0xff]  }
   0x4   :  { %1286 = vmatprep.subr.bf16.mxu0 %v5000_v4  ;;  %1458 = vmatprep.subr.bf16.mxu1 %v5002_v5  ;;  %v5008_v9 = vld [vmem:[%s7610_s2 + $0x4c] ss:$16 sps:$4 sm:$0xff]   ;;  %v5010_v10 = vld [vmem:[%s7610_s2 + $0x40] ss:$16 sps:$4 sm:$0xff]   ;;  %v5011_v11 = vld [vmem:[%s7610_s2 + $0x48] ss:$16 sps:$4 sm:$0xff]  }
   0x5   :  { %v5012_v12 = vld [vmem:[%s7610_s2 + $0x64] ss:$16 sps:$4 sm:$0xff]   ;;  %v5014_v13 = vld [vmem:[%s7610_s2 + $0x6c] ss:$16 sps:$4 sm:$0xff]   ;;  %v5016_v14 = vld [vmem:[%s7610_s2 + $0x60] ss:$16 sps:$4 sm:$0xff]  }
   0x6   :  { %v5017_v15 = vld [vmem:[%s7610_s2 + $0x68] ss:$16 sps:$4 sm:$0xff]   ;;  %v5018_v16 = vld [vmem:[%s7610_s2 + $0x84] ss:$16 sps:$4 sm:$0xff]   ;;  %v5020_v17 = vld [vmem:[%s7610_s2 + $0x8c] ss:$16 sps:$4 sm:$0xff]  }
   0x7   :  { %1287 = vmatpush1.bf16.msra.mxu0 %v5004_v6  ;;  %1459 = vmatpush1.bf16.msra.mxu1 %v5005_v7  ;;  %v5022_v18 = vld [vmem:[%s7610_s2 + $0x80] ss:$16 sps:$4 sm:$0xff]   ;;  %v5023_v19 = vld [vmem:[%s7610_s2 + $0x88] ss:$16 sps:$4 sm:$0xff]   ;;  %v5024_v20 = vld [vmem:[%s7610_s2 + $0xa4] ss:$16 sps:$4 sm:$0xff]  }
   0x8   :  { %1288 = vmatprep.subr.bf16.mxu0 %v5006_v8  ;;  %1460 = vmatprep.subr.bf16.mxu1 %v5008_v9  ;;  %v5026_v21 = vld [vmem:[%s7610_s2 + $0xac] ss:$16 sps:$4 sm:$0xff]   ;;  %v5028_v22 = vld [vmem:[%s7610_s2 + $0xa0] ss:$16 sps:$4 sm:$0xff]   ;;  %v5029_v23 = vld [vmem:[%s7610_s2 + $0xa8] ss:$16 sps:$4 sm:$0xff]  }
   0x9   :  { %v5030_v24 = vld [vmem:[%s7610_s2 + $0xc4] ss:$16 sps:$4 sm:$0xff]   ;;  %v5032_v25 = vld [vmem:[%s7610_s2 + $0xcc] ss:$16 sps:$4 sm:$0xff]   ;;  %v5034_v26 = vld [vmem:[%s7610_s2 + $0xc0] ss:$16 sps:$4 sm:$0xff]  }
   0xa   :  { %v5035_v27 = vld [vmem:[%s7610_s2 + $0xc8] ss:$16 sps:$4 sm:$0xff]   ;;  %v5036_v28 = vld [vmem:[%s7610_s2 + $0xe4] ss:$16 sps:$4 sm:$0xff]   ;;  %v5038_v29 = vld [vmem:[%s7610_s2 + $0xec] ss:$16 sps:$4 sm:$0xff]  }
   0xb   :  { %1289 = vmatpush1.bf16.msra.mxu0 %v5010_v10  ;;  %1461 = vmatpush1.bf16.msra.mxu1 %v5011_v11  ;;  %v5040_v30 = vld [vmem:[%s7610_s2 + $0xe0] ss:$16 sps:$4 sm:$0xff]   ;;  %v5041_v31 = vld [vmem:[%s7610_s2 + $0xe8] ss:$16 sps:$4 sm:$0xff]   ;;  %v5042_v32 = vld [vmem:[%s7610_s2 + $0x104] ss:$16 sps:$4 sm:$0xff]  }
   0xc   :  { %1290 = vmatprep.subr.bf16.mxu0 %v5012_v12  ;;  %1462 = vmatprep.subr.bf16.mxu1 %v5014_v13  ;;  %v5044_v33 = vld [vmem:[%s7610_s2 + $0x10c] ss:$16 sps:$4 sm:$0xff]   ;;  %v5046_v34 = vld [vmem:[%s7610_s2 + $0x100] ss:$16 sps:$4 sm:$0xff]   ;;  %v5047_v35 = vld [vmem:[%s7610_s2 + $0x108] ss:$16 sps:$4 sm:$0xff]  }
   0xd   :  { %v5048_v36 = vld [vmem:[%s7610_s2 + $0x124] ss:$16 sps:$4 sm:$0xff]   ;;  %v5050_v37 = vld [vmem:[%s7610_s2 + $0x12c] ss:$16 sps:$4 sm:$0xff]   ;;  %v5052_v38 = vld [vmem:[%s7610_s2 + $0x120] ss:$16 sps:$4 sm:$0xff]  }
   0xe   :  { %v5053_v39 = vld [vmem:[%s7610_s2 + $0x128] ss:$16 sps:$4 sm:$0xff]   ;;  %v5054_v40 = vld [vmem:[%s7610_s2 + $0x144] ss:$16 sps:$4 sm:$0xff]   ;;  %v5056_v41 = vld [vmem:[%s7610_s2 + $0x14c] ss:$16 sps:$4 sm:$0xff]  }
   0xf   :  { %1291 = vmatpush1.bf16.msra.mxu0 %v5016_v14  ;;  %1463 = vmatpush1.bf16.msra.mxu1 %v5017_v15  ;;  %v5058_v42 = vld [vmem:[%s7610_s2 + $0x140] ss:$16 sps:$4 sm:$0xff]   ;;  %v5059_v43 = vld [vmem:[%s7610_s2 + $0x148] ss:$16 sps:$4 sm:$0xff]   ;;  %v5060_v44 = vld [vmem:[%s7610_s2 + $0x164] ss:$16 sps:$4 sm:$0xff]  }
  0x10   :  { %1292 = vmatprep.subr.bf16.mxu0 %v5018_v16  ;;  %1464 = vmatprep.subr.bf16.mxu1 %v5020_v17  ;;  %v5062_v45 = vld [vmem:[%s7610_s2 + $0x16c] ss:$16 sps:$4 sm:$0xff]   ;;  %v5064_v46 = vld [vmem:[%s7610_s2 + $0x160] ss:$16 sps:$4 sm:$0xff]   ;;  %v5065_v47 = vld [vmem:[%s7610_s2 + $0x168] ss:$16 sps:$4 sm:$0xff]  }
  0x11   :  { %v5092_v48 = vld [vmem:[%s7611_s0 + $0x4] ss:$28 sps:$4 sm:$0xff]   ;;  %v5068_v50 = vld [vmem:[%s7610_s2 + $0x18c] ss:$16 sps:$4 sm:$0xff]   ;;  %v5071_v52 = vld [vmem:[%s7610_s2 + $0x188] ss:$16 sps:$4 sm:$0xff]  }
  0x12   :  { %v5066_v49 = vld [vmem:[%s7610_s2 + $0x184] ss:$16 sps:$4 sm:$0xff]   ;;  %1316 = vmatprep.mubr.bf16.mxu0 %v5092_v48  ;;  %1488 = vmatprep.mubr.bf16.mxu1 %v5092_v48  ;;  %v5070_v51 = vld [vmem:[%s7610_s2 + $0x180] ss:$16 sps:$4 sm:$0xff]   ;;  %v5074_v54 = vld [vmem:[%s7610_s2 + $0x1ac] ss:$16 sps:$4 sm:$0xff]  }
  0x13   :  { %1293 = vmatpush1.bf16.msra.mxu0 %v5022_v18  ;;  %1465 = vmatpush1.bf16.msra.mxu1 %v5023_v19  ;;  %v5072_v53 = vld [vmem:[%s7610_s2 + $0x1a4] ss:$16 sps:$4 sm:$0xff]   ;;  %v5076_v55 = vld [vmem:[%s7610_s2 + $0x1a0] ss:$16 sps:$4 sm:$0xff]   ;;  %v5077_v56 = vld [vmem:[%s7610_s2 + $0x1a8] ss:$16 sps:$4 sm:$0xff]  }
  0x14   :  { %1294 = vmatprep.subr.bf16.mxu0 %v5024_v20  ;;  %1466 = vmatprep.subr.bf16.mxu1 %v5026_v21  ;;  %v5078_v57 = vld [vmem:[%s7610_s2 + $0x1c4] ss:$16 sps:$4 sm:$0xff]   ;;  %v5080_v58 = vld [vmem:[%s7610_s2 + $0x1cc] ss:$16 sps:$4 sm:$0xff]   ;;  %v5082_v59 = vld [vmem:[%s7610_s2 + $0x1c0] ss:$16 sps:$4 sm:$0xff]  }
  0x15   :  { %v5083_v60 = vld [vmem:[%s7610_s2 + $0x1c8] ss:$16 sps:$4 sm:$0xff]   ;;  %v5084_v61 = vld [vmem:[%s7610_s2 + $0x1e4] ss:$16 sps:$4 sm:$0xff]   ;;  %v5086_v62 = vld [vmem:[%s7610_s2 + $0x1ec] ss:$16 sps:$4 sm:$0xff]  }
  0x16   :  { %v5088_v63 = vld [vmem:[%s7610_s2 + $0x1e0] ss:$16 sps:$4 sm:$0xff]   ;;  %v5089_v0 = vld [vmem:[%s7610_s2 + $0x1e8] ss:$16 sps:$4 sm:$0xff]   ;;  %v5095_v1 = vld [vmem:[%s7610_s2 + $0x204] ss:$16 sps:$4 sm:$0xff]  }
  0x17   :  { %1295 = vmatpush1.bf16.msra.mxu0 %v5028_v22  ;;  %1467 = vmatpush1.bf16.msra.mxu1 %v5029_v23  ;;  %v5098_v2 = vld [vmem:[%s7610_s2 + $0x20c] ss:$16 sps:$4 sm:$0xff]   ;;  %v5093_v4 = vld [vmem:[%s7610_s2 + $0x200] ss:$16 sps:$4 sm:$0xff]   ;;  %v5096_v5 = vld [vmem:[%s7610_s2 + $0x208] ss:$16 sps:$4 sm:$0xff]  }
  0x18   :  { %1296 = vmatprep.subr.bf16.mxu0 %v5030_v24  ;;  %1468 = vmatprep.subr.bf16.mxu1 %v5032_v25  ;;  %v5090_v3 = vld [vmem:[%s7611_s0] ss:$28 sps:$4 sm:$0xff]   ;;  %v5101_v6 = vld [vmem:[%s7610_s2 + $0x224] ss:$16 sps:$4 sm:$0xff]   ;;  %v5102_v9 = vld [vmem:[%s7610_s2 + $0x228] ss:$16 sps:$4 sm:$0xff]  }
  0x19   :  { %v5104_v7 = vld [vmem:[%s7610_s2 + $0x22c] ss:$16 sps:$4 sm:$0xff]   ;;  %v5099_v8 = vld [vmem:[%s7610_s2 + $0x220] ss:$16 sps:$4 sm:$0xff]   ;;  %v5107_v10 = vld [vmem:[%s7610_s2 + $0x244] ss:$16 sps:$4 sm:$0xff]  }
  0x1a   :  { %v5110_v11 = vld [vmem:[%s7610_s2 + $0x24c] ss:$16 sps:$4 sm:$0xff]   ;;  %v5105_v12 = vld [vmem:[%s7610_s2 + $0x240] ss:$16 sps:$4 sm:$0xff]   ;;  %v5108_v13 = vld [vmem:[%s7610_s2 + $0x248] ss:$16 sps:$4 sm:$0xff]  }
  0x1b   :  { %1297 = vmatpush1.bf16.msra.mxu0 %v5034_v26  ;;  %1469 = vmatpush1.bf16.msra.mxu1 %v5035_v27  ;;  %v5113_v14 = vld [vmem:[%s7610_s2 + $0x264] ss:$16 sps:$4 sm:$0xff]   ;;  %v5116_v15 = vld [vmem:[%s7610_s2 + $0x26c] ss:$16 sps:$4 sm:$0xff]   ;;  %v5111_v16 = vld [vmem:[%s7610_s2 + $0x260] ss:$16 sps:$4 sm:$0xff]  }
  0x1c   :  { %1298 = vmatprep.subr.bf16.mxu0 %v5036_v28  ;;  %1470 = vmatprep.subr.bf16.mxu1 %v5038_v29  ;;  %v5114_v17 = vld [vmem:[%s7610_s2 + $0x268] ss:$16 sps:$4 sm:$0xff]   ;;  %v5119_v18 = vld [vmem:[%s7610_s2 + $0x284] ss:$16 sps:$4 sm:$0xff]   ;;  %v5122_v19 = vld [vmem:[%s7610_s2 + $0x28c] ss:$16 sps:$4 sm:$0xff]  }
  0x1d   :  { %v5117_v20 = vld [vmem:[%s7610_s2 + $0x280] ss:$16 sps:$4 sm:$0xff]   ;;  %v5120_v21 = vld [vmem:[%s7610_s2 + $0x288] ss:$16 sps:$4 sm:$0xff]   ;;  %v5125_v22 = vld [vmem:[%s7610_s2 + $0x2a4] ss:$16 sps:$4 sm:$0xff]  }
  0x1e   :  { %v5128_v23 = vld [vmem:[%s7610_s2 + $0x2ac] ss:$16 sps:$4 sm:$0xff]   ;;  %v5123_v24 = vld [vmem:[%s7610_s2 + $0x2a0] ss:$16 sps:$4 sm:$0xff]   ;;  %v5126_v25 = vld [vmem:[%s7610_s2 + $0x2a8] ss:$16 sps:$4 sm:$0xff]  }
  0x1f   :  { %1299 = vmatpush1.bf16.msra.mxu0 %v5040_v30  ;;  %1471 = vmatpush1.bf16.msra.mxu1 %v5041_v31  ;;  %v5131_v26 = vld [vmem:[%s7610_s2 + $0x2c4] ss:$16 sps:$4 sm:$0xff]   ;;  %v5134_v27 = vld [vmem:[%s7610_s2 + $0x2cc] ss:$16 sps:$4 sm:$0xff]   ;;  %v5129_v28 = vld [vmem:[%s7610_s2 + $0x2c0] ss:$16 sps:$4 sm:$0xff]  }
  0x20   :  { %1300 = vmatprep.subr.bf16.mxu0 %v5042_v32  ;;  %1472 = vmatprep.subr.bf16.mxu1 %v5044_v33  ;;  %v5132_v29 = vld [vmem:[%s7610_s2 + $0x2c8] ss:$16 sps:$4 sm:$0xff]   ;;  %v5137_v31 = vld [vmem:[%s7610_s2 + $0x2e4] ss:$16 sps:$4 sm:$0xff]   ;;  %v5140_v32 = vld [vmem:[%s7610_s2 + $0x2ec] ss:$16 sps:$4 sm:$0xff]  }
  0x21   :  { %v5191_v30 = vld [vmem:[%s7611_s0 + $0xc] ss:$28 sps:$4 sm:$0xff]   ;;  %v5135_v33 = vld [vmem:[%s7610_s2 + $0x2e0] ss:$16 sps:$4 sm:$0xff]  }
  0x22   :  { %v5164_v48 = vld [vmem:[%s7610_s2 + $0x36c] ss:$16 sps:$4 sm:$0xff]  }
  0x23   :  { %1301 = vmatpush1.bf16.msra.mxu0 %v5046_v34  ;;  %1473 = vmatpush1.bf16.msra.mxu1 %v5047_v35  ;;  %v5138_v34 = vld [vmem:[%s7610_s2 + $0x2e8] ss:$16 sps:$4 sm:$0xff]   ;;  %v5143_v35 = vld [vmem:[%s7610_s2 + $0x304] ss:$16 sps:$4 sm:$0xff]  }
  0x24   :  { %1302 = vmatprep.subr.bf16.mxu0 %v5048_v36  ;;  %1474 = vmatprep.subr.bf16.mxu1 %v5050_v37  ;;  %v5146_v36 = vld [vmem:[%s7610_s2 + $0x30c] ss:$16 sps:$4 sm:$0xff]   ;;  %v5141_v37 = vld [vmem:[%s7610_s2 + $0x300] ss:$16 sps:$4 sm:$0xff]  }
  0x27   :  { %1303 = vmatpush1.bf16.msra.mxu0 %v5052_v38  ;;  %1475 = vmatpush1.bf16.msra.mxu1 %v5053_v39  ;;  %v5144_v38 = vld [vmem:[%s7610_s2 + $0x308] ss:$16 sps:$4 sm:$0xff]   ;;  %v5149_v39 = vld [vmem:[%s7610_s2 + $0x324] ss:$16 sps:$4 sm:$0xff]  }
  0x28   :  { %1304 = vmatprep.subr.bf16.mxu0 %v5054_v40  ;;  %1476 = vmatprep.subr.bf16.mxu1 %v5056_v41  ;;  %v5152_v40 = vld [vmem:[%s7610_s2 + $0x32c] ss:$16 sps:$4 sm:$0xff]   ;;  %v5147_v41 = vld [vmem:[%s7610_s2 + $0x320] ss:$16 sps:$4 sm:$0xff]  }
  0x2b   :  { %1305 = vmatpush1.bf16.msra.mxu0 %v5058_v42  ;;  %1477 = vmatpush1.bf16.msra.mxu1 %v5059_v43  ;;  %v5150_v42 = vld [vmem:[%s7610_s2 + $0x328] ss:$16 sps:$4 sm:$0xff]   ;;  %v5155_v43 = vld [vmem:[%s7610_s2 + $0x344] ss:$16 sps:$4 sm:$0xff]  }
  0x2c   :  { %1306 = vmatprep.subr.bf16.mxu0 %v5060_v44  ;;  %1478 = vmatprep.subr.bf16.mxu1 %v5062_v45  ;;  %v5158_v44 = vld [vmem:[%s7610_s2 + $0x34c] ss:$16 sps:$4 sm:$0xff]   ;;  %v5153_v45 = vld [vmem:[%s7610_s2 + $0x340] ss:$16 sps:$4 sm:$0xff]  }
  0x2f   :  { %1307 = vmatpush1.bf16.msra.mxu0 %v5064_v46  ;;  %1479 = vmatpush1.bf16.msra.mxu1 %v5065_v47  ;;  %v5156_v46 = vld [vmem:[%s7610_s2 + $0x348] ss:$16 sps:$4 sm:$0xff]   ;;  %v5161_v47 = vld [vmem:[%s7610_s2 + $0x364] ss:$16 sps:$4 sm:$0xff]  }
  0x30   :  { %1308 = vmatprep.subr.bf16.mxu0 %v5066_v49  ;;  %1480 = vmatprep.subr.bf16.mxu1 %v5068_v50  ;;  %v5159_v49 = vld [vmem:[%s7610_s2 + $0x360] ss:$16 sps:$4 sm:$0xff]   ;;  %v5162_v50 = vld [vmem:[%s7610_s2 + $0x368] ss:$16 sps:$4 sm:$0xff]  }
  0x33   :  { %1309 = vmatpush1.bf16.msra.mxu0 %v5070_v51  ;;  %1481 = vmatpush1.bf16.msra.mxu1 %v5071_v52  ;;  %v5167_v51 = vld [vmem:[%s7610_s2 + $0x384] ss:$16 sps:$4 sm:$0xff]   ;;  %v5170_v52 = vld [vmem:[%s7610_s2 + $0x38c] ss:$16 sps:$4 sm:$0xff]  }
  0x34   :  { %1310 = vmatprep.subr.bf16.mxu0 %v5072_v53  ;;  %1482 = vmatprep.subr.bf16.mxu1 %v5074_v54  ;;  %v5165_v53 = vld [vmem:[%s7610_s2 + $0x380] ss:$16 sps:$4 sm:$0xff]   ;;  %v5168_v54 = vld [vmem:[%s7610_s2 + $0x388] ss:$16 sps:$4 sm:$0xff]  }
  0x37   :  { %1311 = vmatpush1.bf16.msra.mxu0 %v5076_v55  ;;  %1483 = vmatpush1.bf16.msra.mxu1 %v5077_v56  ;;  %v5173_v55 = vld [vmem:[%s7610_s2 + $0x3a4] ss:$16 sps:$4 sm:$0xff]   ;;  %v5176_v56 = vld [vmem:[%s7610_s2 + $0x3ac] ss:$16 sps:$4 sm:$0xff]  }
  0x38   :  { %1312 = vmatprep.subr.bf16.mxu0 %v5078_v57  ;;  %1484 = vmatprep.subr.bf16.mxu1 %v5080_v58  ;;  %v5171_v57 = vld [vmem:[%s7610_s2 + $0x3a0] ss:$16 sps:$4 sm:$0xff]   ;;  %v5174_v58 = vld [vmem:[%s7610_s2 + $0x3a8] ss:$16 sps:$4 sm:$0xff]  }
  0x3b   :  { %1313 = vmatpush1.bf16.msra.mxu0 %v5082_v59  ;;  %1485 = vmatpush1.bf16.msra.mxu1 %v5083_v60  ;;  %v5179_v59 = vld [vmem:[%s7610_s2 + $0x3c4] ss:$16 sps:$4 sm:$0xff]   ;;  %v5182_v60 = vld [vmem:[%s7610_s2 + $0x3cc] ss:$16 sps:$4 sm:$0xff]  }
  0x3c   :  { %1314 = vmatprep.subr.bf16.mxu0 %v5084_v61  ;;  %1486 = vmatprep.subr.bf16.mxu1 %v5086_v62  ;;  %v5177_v61 = vld [vmem:[%s7610_s2 + $0x3c0] ss:$16 sps:$4 sm:$0xff]   ;;  %v5180_v62 = vld [vmem:[%s7610_s2 + $0x3c8] ss:$16 sps:$4 sm:$0xff]  }
  0x3f   :  { %1315 = vmatpush1.bf16.msra.mxu0 %v5088_v63  ;;  %1487 = vmatpush1.bf16.msra.mxu1 %v5089_v0  ;;  %v5185_v63 = vld [vmem:[%s7610_s2 + $0x3e4] ss:$16 sps:$4 sm:$0xff]   ;;  %v5188_v0 = vld [vmem:[%s7610_s2 + $0x3ec] ss:$16 sps:$4 sm:$0xff]  }
  0x40   :  { %1327 = vmatprep.subr.bf16.mxu0 %v5095_v1  ;;  %1499 = vmatprep.subr.bf16.mxu1 %v5098_v2  ;;  %v5183_v1 = vld [vmem:[%s7610_s2 + $0x3e0] ss:$16 sps:$4 sm:$0xff]   ;;  %v5186_v2 = vld [vmem:[%s7610_s2 + $0x3e8] ss:$16 sps:$4 sm:$0xff]  }
  0x42   :  { %1317 = vmatmul.mubr.bf16.vlgmr.msra.gmra.mrb[0].mxu0 %v5090_v3  ;;  %1489 = vmatmul.mubr.bf16.vlgmr.msra.gmra.mrb[0].mxu1 %v5090_v3  ;;  %v5194_v3 = vld [vmem:[%s7610_s2 + $0x404] ss:$16 sps:$4 sm:$0xff]  }
  0x43   :  { %1328 = vmatpush1.bf16.msra.mxu0 %v5093_v4  ;;  %1500 = vmatpush1.bf16.msra.mxu1 %v5096_v5  ;;  %v5197_v4 = vld [vmem:[%s7610_s2 + $0x40c] ss:$16 sps:$4 sm:$0xff]   ;;  %v5189_v5 = vld [vmem:[%s7611_s0 + $0x8] ss:$28 sps:$4 sm:$0xff]  }
  0x44   :  { %1329 = vmatprep.subr.bf16.mxu0 %v5101_v6  ;;  %1501 = vmatprep.subr.bf16.mxu1 %v5104_v7  ;;  %v5192_v6 = vld [vmem:[%s7610_s2 + $0x400] ss:$16 sps:$4 sm:$0xff]   ;;  %v5195_v7 = vld [vmem:[%s7610_s2 + $0x408] ss:$16 sps:$4 sm:$0xff]  }
  0x45   :  { %1359 = vmatprep.mubr.bf16.mxu0 %v5191_v30  ;;  %1531 = vmatprep.mubr.bf16.mxu1 %v5191_v30  ;;  %v5233_v30 = vld [vmem:[%s7610_s2 + $0x4cc] ss:$16 sps:$4 sm:$0xff]  }
  0x47   :  { %1330 = vmatpush1.bf16.msra.mxu0 %v5099_v8  ;;  %1502 = vmatpush1.bf16.msra.mxu1 %v5102_v9  ;;  %v5200_v8 = vld [vmem:[%s7610_s2 + $0x424] ss:$16 sps:$4 sm:$0xff]   ;;  %v5203_v9 = vld [vmem:[%s7610_s2 + $0x42c] ss:$16 sps:$4 sm:$0xff]  }
  0x48   :  { %1331 = vmatprep.subr.bf16.mxu0 %v5107_v10  ;;  %1503 = vmatprep.subr.bf16.mxu1 %v5110_v11  ;;  %v5198_v10 = vld [vmem:[%s7610_s2 + $0x420] ss:$16 sps:$4 sm:$0xff]   ;;  %v5201_v11 = vld [vmem:[%s7610_s2 + $0x428] ss:$16 sps:$4 sm:$0xff]  }
  0x4b   :  { %1332 = vmatpush1.bf16.msra.mxu0 %v5105_v12  ;;  %1504 = vmatpush1.bf16.msra.mxu1 %v5108_v13  ;;  %v5290_v12 = vld [vmem:[%s7611_s0 + $0x14] ss:$28 sps:$4 sm:$0xff]  }
  0x4c   :  { %1333 = vmatprep.subr.bf16.mxu0 %v5113_v14  ;;  %1505 = vmatprep.subr.bf16.mxu1 %v5116_v15  ;;  %v5206_v13 = vld [vmem:[%s7610_s2 + $0x444] ss:$16 sps:$4 sm:$0xff]   ;;  %v5209_v14 = vld [vmem:[%s7610_s2 + $0x44c] ss:$16 sps:$4 sm:$0xff]   ;;  %v5204_v15 = vld [vmem:[%s7610_s2 + $0x440] ss:$16 sps:$4 sm:$0xff]  }
  0x4f   :  { %1334 = vmatpush1.bf16.msra.mxu0 %v5111_v16  ;;  %1506 = vmatpush1.bf16.msra.mxu1 %v5114_v17  ;;  %v5207_v16 = vld [vmem:[%s7610_s2 + $0x448] ss:$16 sps:$4 sm:$0xff]   ;;  %v5212_v17 = vld [vmem:[%s7610_s2 + $0x464] ss:$16 sps:$4 sm:$0xff]  }
  0x50   :  { %1335 = vmatprep.subr.bf16.mxu0 %v5119_v18  ;;  %1507 = vmatprep.subr.bf16.mxu1 %v5122_v19  ;;  %v5215_v18 = vld [vmem:[%s7610_s2 + $0x46c] ss:$16 sps:$4 sm:$0xff]   ;;  %v5210_v19 = vld [vmem:[%s7610_s2 + $0x460] ss:$16 sps:$4 sm:$0xff]  }
  0x53   :  { %1336 = vmatpush1.bf16.msra.mxu0 %v5117_v20  ;;  %1508 = vmatpush1.bf16.msra.mxu1 %v5120_v21  ;;  %v5213_v20 = vld [vmem:[%s7610_s2 + $0x468] ss:$16 sps:$4 sm:$0xff]   ;;  %v5218_v21 = vld [vmem:[%s7610_s2 + $0x484] ss:$16 sps:$4 sm:$0xff]  }
  0x54   :  { %1337 = vmatprep.subr.bf16.mxu0 %v5125_v22  ;;  %1509 = vmatprep.subr.bf16.mxu1 %v5128_v23  ;;  %v5221_v22 = vld [vmem:[%s7610_s2 + $0x48c] ss:$16 sps:$4 sm:$0xff]   ;;  %v5216_v23 = vld [vmem:[%s7610_s2 + $0x480] ss:$16 sps:$4 sm:$0xff]  }
  0x57   :  { %1338 = vmatpush1.bf16.msra.mxu0 %v5123_v24  ;;  %1510 = vmatpush1.bf16.msra.mxu1 %v5126_v25  ;;  %v5219_v24 = vld [vmem:[%s7610_s2 + $0x488] ss:$16 sps:$4 sm:$0xff]   ;;  %v5224_v25 = vld [vmem:[%s7610_s2 + $0x4a4] ss:$16 sps:$4 sm:$0xff]  }
  0x58   :  { %1339 = vmatprep.subr.bf16.mxu0 %v5131_v26  ;;  %1511 = vmatprep.subr.bf16.mxu1 %v5134_v27  ;;  %v5227_v26 = vld [vmem:[%s7610_s2 + $0x4ac] ss:$16 sps:$4 sm:$0xff]   ;;  %v5222_v27 = vld [vmem:[%s7610_s2 + $0x4a0] ss:$16 sps:$4 sm:$0xff]  }
  0x5b   :  { %1340 = vmatpush1.bf16.msra.mxu0 %v5129_v28  ;;  %1512 = vmatpush1.bf16.msra.mxu1 %v5132_v29  ;;  %v5225_v28 = vld [vmem:[%s7610_s2 + $0x4a8] ss:$16 sps:$4 sm:$0xff]   ;;  %v5230_v29 = vld [vmem:[%s7610_s2 + $0x4c4] ss:$16 sps:$4 sm:$0xff]  }
  0x5c   :  { %1341 = vmatprep.subr.bf16.mxu0 %v5137_v31  ;;  %1513 = vmatprep.subr.bf16.mxu1 %v5140_v32  ;;  %v5228_v31 = vld [vmem:[%s7610_s2 + $0x4c0] ss:$16 sps:$4 sm:$0xff]   ;;  %v5231_v32 = vld [vmem:[%s7610_s2 + $0x4c8] ss:$16 sps:$4 sm:$0xff]  }
  0x5f   :  { %1342 = vmatpush1.bf16.msra.mxu0 %v5135_v33  ;;  %1514 = vmatpush1.bf16.msra.mxu1 %v5138_v34  ;;  %v5236_v33 = vld [vmem:[%s7610_s2 + $0x4e4] ss:$16 sps:$4 sm:$0xff]   ;;  %v5239_v34 = vld [vmem:[%s7610_s2 + $0x4ec] ss:$16 sps:$4 sm:$0xff]  }
  0x60   :  { %1343 = vmatprep.subr.bf16.mxu0 %v5143_v35  ;;  %1515 = vmatprep.subr.bf16.mxu1 %v5146_v36  ;;  %v5234_v35 = vld [vmem:[%s7610_s2 + $0x4e0] ss:$16 sps:$4 sm:$0xff]   ;;  %v5237_v36 = vld [vmem:[%s7610_s2 + $0x4e8] ss:$16 sps:$4 sm:$0xff]  }
  0x63   :  { %1344 = vmatpush1.bf16.msra.mxu0 %v5141_v37  ;;  %1516 = vmatpush1.bf16.msra.mxu1 %v5144_v38  ;;  %v5242_v37 = vld [vmem:[%s7610_s2 + $0x504] ss:$16 sps:$4 sm:$0xff]   ;;  %v5245_v38 = vld [vmem:[%s7610_s2 + $0x50c] ss:$16 sps:$4 sm:$0xff]  }
  0x64   :  { %1345 = vmatprep.subr.bf16.mxu0 %v5149_v39  ;;  %1517 = vmatprep.subr.bf16.mxu1 %v5152_v40  ;;  %v5240_v39 = vld [vmem:[%s7610_s2 + $0x500] ss:$16 sps:$4 sm:$0xff]   ;;  %v5243_v40 = vld [vmem:[%s7610_s2 + $0x508] ss:$16 sps:$4 sm:$0xff]  }
  0x67   :  { %1346 = vmatpush1.bf16.msra.mxu0 %v5147_v41  ;;  %1518 = vmatpush1.bf16.msra.mxu1 %v5150_v42  ;;  %v5248_v41 = vld [vmem:[%s7610_s2 + $0x524] ss:$16 sps:$4 sm:$0xff]   ;;  %v5251_v42 = vld [vmem:[%s7610_s2 + $0x52c] ss:$16 sps:$4 sm:$0xff]  }
  0x68   :  { %1347 = vmatprep.subr.bf16.mxu0 %v5155_v43  ;;  %1519 = vmatprep.subr.bf16.mxu1 %v5158_v44  ;;  %v5246_v43 = vld [vmem:[%s7610_s2 + $0x520] ss:$16 sps:$4 sm:$0xff]   ;;  %v5249_v44 = vld [vmem:[%s7610_s2 + $0x528] ss:$16 sps:$4 sm:$0xff]  }
  0x6b   :  { %1348 = vmatpush1.bf16.msra.mxu0 %v5153_v45  ;;  %1520 = vmatpush1.bf16.msra.mxu1 %v5156_v46  ;;  %v5254_v45 = vld [vmem:[%s7610_s2 + $0x544] ss:$16 sps:$4 sm:$0xff]   ;;  %v5257_v46 = vld [vmem:[%s7610_s2 + $0x54c] ss:$16 sps:$4 sm:$0xff]  }
  0x6c   :  { %1349 = vmatprep.subr.bf16.mxu0 %v5161_v47  ;;  %1521 = vmatprep.subr.bf16.mxu1 %v5164_v48  ;;  %v5252_v47 = vld [vmem:[%s7610_s2 + $0x540] ss:$16 sps:$4 sm:$0xff]   ;;  %v5255_v48 = vld [vmem:[%s7610_s2 + $0x548] ss:$16 sps:$4 sm:$0xff]  }
  0x6f   :  { %1350 = vmatpush1.bf16.msra.mxu0 %v5159_v49  ;;  %1522 = vmatpush1.bf16.msra.mxu1 %v5162_v50  ;;  %v5260_v49 = vld [vmem:[%s7610_s2 + $0x564] ss:$16 sps:$4 sm:$0xff]   ;;  %v5263_v50 = vld [vmem:[%s7610_s2 + $0x56c] ss:$16 sps:$4 sm:$0xff]  }
  0x70   :  { %1351 = vmatprep.subr.bf16.mxu0 %v5167_v51  ;;  %1523 = vmatprep.subr.bf16.mxu1 %v5170_v52  ;;  %v5258_v51 = vld [vmem:[%s7610_s2 + $0x560] ss:$16 sps:$4 sm:$0xff]   ;;  %v5261_v52 = vld [vmem:[%s7610_s2 + $0x568] ss:$16 sps:$4 sm:$0xff]  }
  0x73   :  { %1352 = vmatpush1.bf16.msra.mxu0 %v5165_v53  ;;  %1524 = vmatpush1.bf16.msra.mxu1 %v5168_v54  ;;  %v5266_v53 = vld [vmem:[%s7610_s2 + $0x584] ss:$16 sps:$4 sm:$0xff]   ;;  %v5269_v54 = vld [vmem:[%s7610_s2 + $0x58c] ss:$16 sps:$4 sm:$0xff]  }
  0x74   :  { %1353 = vmatprep.subr.bf16.mxu0 %v5173_v55  ;;  %1525 = vmatprep.subr.bf16.mxu1 %v5176_v56  ;;  %v5264_v55 = vld [vmem:[%s7610_s2 + $0x580] ss:$16 sps:$4 sm:$0xff]   ;;  %v5267_v56 = vld [vmem:[%s7610_s2 + $0x588] ss:$16 sps:$4 sm:$0xff]  }
  0x77   :  { %1354 = vmatpush1.bf16.msra.mxu0 %v5171_v57  ;;  %1526 = vmatpush1.bf16.msra.mxu1 %v5174_v58  ;;  %v5272_v57 = vld [vmem:[%s7610_s2 + $0x5a4] ss:$16 sps:$4 sm:$0xff]   ;;  %v5275_v58 = vld [vmem:[%s7610_s2 + $0x5ac] ss:$16 sps:$4 sm:$0xff]  }
  0x78   :  { %1355 = vmatprep.subr.bf16.mxu0 %v5179_v59  ;;  %1527 = vmatprep.subr.bf16.mxu1 %v5182_v60  ;;  %v5270_v59 = vld [vmem:[%s7610_s2 + $0x5a0] ss:$16 sps:$4 sm:$0xff]   ;;  %v5273_v60 = vld [vmem:[%s7610_s2 + $0x5a8] ss:$16 sps:$4 sm:$0xff]  }
  0x7b   :  { %1356 = vmatpush1.bf16.msra.mxu0 %v5177_v61  ;;  %1528 = vmatpush1.bf16.msra.mxu1 %v5180_v62  ;;  %v5278_v61 = vld [vmem:[%s7610_s2 + $0x5c4] ss:$16 sps:$4 sm:$0xff]   ;;  %v5281_v62 = vld [vmem:[%s7610_s2 + $0x5cc] ss:$16 sps:$4 sm:$0xff]  }
  0x7c   :  { %1357 = vmatprep.subr.bf16.mxu0 %v5185_v63  ;;  %1529 = vmatprep.subr.bf16.mxu1 %v5188_v0  ;;  %v5276_v63 = vld [vmem:[%s7610_s2 + $0x5c0] ss:$16 sps:$4 sm:$0xff]   ;;  %v5279_v0 = vld [vmem:[%s7610_s2 + $0x5c8] ss:$16 sps:$4 sm:$0xff]  }
  0x7f   :  { %1358 = vmatpush1.bf16.msra.mxu0 %v5183_v1  ;;  %1530 = vmatpush1.bf16.msra.mxu1 %v5186_v2  ;;  %v5284_v1 = vld [vmem:[%s7610_s2 + $0x5e4] ss:$16 sps:$4 sm:$0xff]   ;;  %v5287_v2 = vld [vmem:[%s7610_s2 + $0x5ec] ss:$16 sps:$4 sm:$0xff]  }
  0x80   :  { %1370 = vmatprep.subr.bf16.mxu0 %v5194_v3  ;;  %1542 = vmatprep.subr.bf16.mxu1 %v5197_v4  ;;  %v5282_v3 = vld [vmem:[%s7610_s2 + $0x5e0] ss:$16 sps:$4 sm:$0xff]   ;;  %v5285_v4 = vld [vmem:[%s7610_s2 + $0x5e8] ss:$16 sps:$4 sm:$0xff]  }
  0x82   :  { %1360 = vmatmul.mubr.bf16.vlgmr.msra.gmra.mrb[0].mxu0 %v5189_v5  ;;  %1532 = vmatmul.mubr.bf16.vlgmr.msra.gmra.mrb[0].mxu1 %v5189_v5  ;;  %v5293_v5 = vld [vmem:[%s7610_s2 + $0x604] ss:$16 sps:$4 sm:$0xff]  }
  0x83   :  { %1371 = vmatpush1.bf16.msra.mxu0 %v5192_v6  ;;  %1543 = vmatpush1.bf16.msra.mxu1 %v5195_v7  ;;  %v5296_v6 = vld [vmem:[%s7610_s2 + $0x60c] ss:$16 sps:$4 sm:$0xff]  }
  0x84   :  { %1372 = vmatprep.subr.bf16.mxu0 %v5200_v8  ;;  %1544 = vmatprep.subr.bf16.mxu1 %v5203_v9  ;;  %v5288_v7 = vld [vmem:[%s7611_s0 + $0x10] ss:$28 sps:$4 sm:$0xff]   ;;  %v5294_v9 = vld [vmem:[%s7610_s2 + $0x608] ss:$16 sps:$4 sm:$0xff]  }
  0x85   :  { %1402 = vmatprep.mubr.bf16.mxu0 %v5290_v12  ;;  %1574 = vmatprep.mubr.bf16.mxu1 %v5290_v12  ;;  %v5291_v8 = vld [vmem:[%s7610_s2 + $0x600] ss:$16 sps:$4 sm:$0xff]   ;;  %v5297_v12 = vld [vmem:[%s7611_s0 + $0x18] ss:$28 sps:$4 sm:$0xff]  }
  0x87   :  { %1373 = vmatpush1.bf16.msra.mxu0 %v5198_v10  ;;  %1545 = vmatpush1.bf16.msra.mxu1 %v5201_v11  ;;  %v5300_v10 = vld [vmem:[%s7612_s4 + $0x4] ss:$8 sps:$4 sm:$0xff]   ;;  %v5822_v11 = vmov 0  }
  0x88   :  { %1374 = vmatprep.subr.bf16.mxu0 %v5206_v13  ;;  %1546 = vmatprep.subr.bf16.mxu1 %v5209_v14  ;;  %v5298_v13 = vld [vmem:[%s7612_s4] ss:$8 sps:$4 sm:$0xff]   ;;  %v5303_v14 = vld [vmem:[%s7612_s4 + $0x14] ss:$8 sps:$4 sm:$0xff]  }
  0x8b   :  { %1375 = vmatpush1.bf16.msra.mxu0 %v5204_v15  ;;  %1547 = vmatpush1.bf16.msra.mxu1 %v5207_v16  ;;  %v5301_v15 = vld [vmem:[%s7612_s4 + $0x10] ss:$8 sps:$4 sm:$0xff]   ;;  %v5306_v16 = vld [vmem:[%s7612_s4 + $0x24] ss:$8 sps:$4 sm:$0xff]  }
  0x8c   :  { %1376 = vmatprep.subr.bf16.mxu0 %v5212_v17  ;;  %1548 = vmatprep.subr.bf16.mxu1 %v5215_v18  ;;  %v5304_v17 = vld [vmem:[%s7612_s4 + $0x20] ss:$8 sps:$4 sm:$0xff]   ;;  %v5309_v18 = vld [vmem:[%s7612_s4 + $0x34] ss:$8 sps:$4 sm:$0xff]  }
  0x8f   :  { %1377 = vmatpush1.bf16.msra.mxu0 %v5210_v19  ;;  %1549 = vmatpush1.bf16.msra.mxu1 %v5213_v20  ;;  %v5307_v19 = vld [vmem:[%s7612_s4 + $0x30] ss:$8 sps:$4 sm:$0xff]   ;;  %v5312_v20 = vld [vmem:[%s7612_s4 + $0x44] ss:$8 sps:$4 sm:$0xff]  }
  0x90   :  { %1378 = vmatprep.subr.bf16.mxu0 %v5218_v21  ;;  %1550 = vmatprep.subr.bf16.mxu1 %v5221_v22  ;;  %v5310_v21 = vld [vmem:[%s7612_s4 + $0x40] ss:$8 sps:$4 sm:$0xff]   ;;  %v5315_v22 = vld [vmem:[%s7612_s4 + $0x54] ss:$8 sps:$4 sm:$0xff]  }
  0x93   :  { %1379 = vmatpush1.bf16.msra.mxu0 %v5216_v23  ;;  %1551 = vmatpush1.bf16.msra.mxu1 %v5219_v24  ;;  %v5313_v23 = vld [vmem:[%s7612_s4 + $0x50] ss:$8 sps:$4 sm:$0xff]   ;;  %v5318_v24 = vld [vmem:[%s7612_s4 + $0x64] ss:$8 sps:$4 sm:$0xff]  }
  0x94   :  { %1380 = vmatprep.subr.bf16.mxu0 %v5224_v25  ;;  %1552 = vmatprep.subr.bf16.mxu1 %v5227_v26  ;;  %v5316_v25 = vld [vmem:[%s7612_s4 + $0x60] ss:$8 sps:$4 sm:$0xff]   ;;  %v5321_v26 = vld [vmem:[%s7612_s4 + $0x74] ss:$8 sps:$4 sm:$0xff]  }
  0x97   :  { %1381 = vmatpush1.bf16.msra.mxu0 %v5222_v27  ;;  %1553 = vmatpush1.bf16.msra.mxu1 %v5225_v28  ;;  %v5319_v27 = vld [vmem:[%s7612_s4 + $0x70] ss:$8 sps:$4 sm:$0xff]   ;;  %v5324_v28 = vld [vmem:[%s7612_s4 + $0x84] ss:$8 sps:$4 sm:$0xff]  }
  0x98   :  { %1382 = vmatprep.subr.bf16.mxu0 %v5230_v29  ;;  %1554 = vmatprep.subr.bf16.mxu1 %v5233_v30  ;;  %v5322_v29 = vld [vmem:[%s7612_s4 + $0x80] ss:$8 sps:$4 sm:$0xff]   ;;  %v5327_v30 = vld [vmem:[%s7612_s4 + $0x94] ss:$8 sps:$4 sm:$0xff]  }
  0x9b   :  { %1383 = vmatpush1.bf16.msra.mxu0 %v5228_v31  ;;  %1555 = vmatpush1.bf16.msra.mxu1 %v5231_v32  ;;  %v5325_v31 = vld [vmem:[%s7612_s4 + $0x90] ss:$8 sps:$4 sm:$0xff]   ;;  %v5330_v32 = vld [vmem:[%s7612_s4 + $0xa4] ss:$8 sps:$4 sm:$0xff]  }
  0x9c   :  { %1384 = vmatprep.subr.bf16.mxu0 %v5236_v33  ;;  %1556 = vmatprep.subr.bf16.mxu1 %v5239_v34  ;;  %v5328_v33 = vld [vmem:[%s7612_s4 + $0xa0] ss:$8 sps:$4 sm:$0xff]   ;;  %v5333_v34 = vld [vmem:[%s7612_s4 + $0xb4] ss:$8 sps:$4 sm:$0xff]  }
  0x9f   :  { %1385 = vmatpush1.bf16.msra.mxu0 %v5234_v35  ;;  %1557 = vmatpush1.bf16.msra.mxu1 %v5237_v36  ;;  %v5331_v35 = vld [vmem:[%s7612_s4 + $0xb0] ss:$8 sps:$4 sm:$0xff]   ;;  %v5336_v36 = vld [vmem:[%s7612_s4 + $0xc4] ss:$8 sps:$4 sm:$0xff]  }
  0xa0   :  { %1386 = vmatprep.subr.bf16.mxu0 %v5242_v37  ;;  %1558 = vmatprep.subr.bf16.mxu1 %v5245_v38  ;;  %v5334_v37 = vld [vmem:[%s7612_s4 + $0xc0] ss:$8 sps:$4 sm:$0xff]   ;;  %v5339_v38 = vld [vmem:[%s7612_s4 + $0xd4] ss:$8 sps:$4 sm:$0xff]  }
  0xa3   :  { %1387 = vmatpush1.bf16.msra.mxu0 %v5240_v39  ;;  %1559 = vmatpush1.bf16.msra.mxu1 %v5243_v40  ;;  %v5337_v39 = vld [vmem:[%s7612_s4 + $0xd0] ss:$8 sps:$4 sm:$0xff]   ;;  %v5342_v40 = vld [vmem:[%s7612_s4 + $0xe4] ss:$8 sps:$4 sm:$0xff]  }
  0xa4   :  { %1388 = vmatprep.subr.bf16.mxu0 %v5248_v41  ;;  %1560 = vmatprep.subr.bf16.mxu1 %v5251_v42  ;;  %v5340_v41 = vld [vmem:[%s7612_s4 + $0xe0] ss:$8 sps:$4 sm:$0xff]   ;;  %v5345_v42 = vld [vmem:[%s7612_s4 + $0xf4] ss:$8 sps:$4 sm:$0xff]  }
  0xa7   :  { %1389 = vmatpush1.bf16.msra.mxu0 %v5246_v43  ;;  %1561 = vmatpush1.bf16.msra.mxu1 %v5249_v44  ;;  %v5343_v43 = vld [vmem:[%s7612_s4 + $0xf0] ss:$8 sps:$4 sm:$0xff]   ;;  %v5348_v44 = vld [vmem:[%s7612_s4 + $0x104] ss:$8 sps:$4 sm:$0xff]  }
  0xa8   :  { %1390 = vmatprep.subr.bf16.mxu0 %v5254_v45  ;;  %1562 = vmatprep.subr.bf16.mxu1 %v5257_v46  ;;  %v5394_v45 = vld [vmem:[%s7613_s6] ss:$16 sps:$4 sm:$0xff]   ;;  %v5396_v46 = vld [vmem:[%s7613_s6 + $0x4] ss:$16 sps:$4 sm:$0xff]  }
  0xab   :  { %1391 = vmatpush1.bf16.msra.mxu0 %v5252_v47  ;;  %1563 = vmatpush1.bf16.msra.mxu1 %v5255_v48  ;;  %v5397_v47 = vld [vmem:[%s7613_s6 + $0x20] ss:$16 sps:$4 sm:$0xff]   ;;  %v5399_v48 = vld [vmem:[%s7613_s6 + $0x24] ss:$16 sps:$4 sm:$0xff]  }
  0xac   :  { %1392 = vmatprep.subr.bf16.mxu0 %v5260_v49  ;;  %1564 = vmatprep.subr.bf16.mxu1 %v5263_v50  ;;  %v245_v49 = vlaneseq }
  0xae   :  { %v6613_v50 = vshrl.u32 %v245_v49, 7  ;;  %v5382_v49 = vld [vmem:[%s7612_s4 + $0x1c0] ss:$8 sps:$4 sm:$0xff]  }
  0xaf   :  { %1393 = vmatpush1.bf16.msra.mxu0 %v5258_v51  ;;  %1565 = vmatpush1.bf16.msra.mxu1 %v5261_v52 }
  0xb0   :  { %1394 = vmatprep.subr.bf16.mxu0 %v5266_v53  ;;  %1566 = vmatprep.subr.bf16.mxu1 %v5269_v54  ;;  %v6616_v51 = vsub.s32 0, %v6613_v50  ;;  %v6619_v52 = vsub.s32 2, %v6613_v50  ;;  %v243_v53 = vld [vmem:[%s7614_s3] sm:$0xf]  ;;  %v6625_v54 = vsub.s32 1, %v6613_v50 }
  0xb3   :  { %1395 = vmatpush1.bf16.msra.mxu0 %v5264_v55  ;;  %1567 = vmatpush1.bf16.msra.mxu1 %v5267_v56  ;;  %v6628_v55 = vsub.s32 3, %v6613_v50  ;;  %v248_v56 = vrot.slane %v243_v53, %v6616_v51 }
  0xb4   :  { %1396 = vmatprep.subr.bf16.mxu0 %v5272_v57  ;;  %1568 = vmatprep.subr.bf16.mxu1 %v5275_v58  ;;  %v256_v57 = vrot.slane %v243_v53, %v6619_v52  ;;  %v252_v58 = vrot.slane %v243_v53, %v6625_v54 }
  0xb7   :  { %1397 = vmatpush1.bf16.msra.mxu0 %v5270_v59  ;;  %1569 = vmatpush1.bf16.msra.mxu1 %v5273_v60  ;;  %v260_v59 = vrot.slane %v243_v53, %v6628_v55  ;;  %v5387_v53 = vld [vmem:[%s7612_s4 + $0x1d4] ss:$8 sps:$4 sm:$0xff]  }
  0xb8   :  { %1398 = vmatprep.subr.bf16.mxu0 %v5278_v61  ;;  %1570 = vmatprep.subr.bf16.mxu1 %v5281_v62 }
  0xbb   :  { %1399 = vmatpush1.bf16.msra.mxu0 %v5276_v63  ;;  %1571 = vmatpush1.bf16.msra.mxu1 %v5279_v0 }
  0xbc   :  { %1400 = vmatprep.subr.bf16.mxu0 %v5284_v1  ;;  %1572 = vmatprep.subr.bf16.mxu1 %v5287_v2 }
  0xbf   :  { %1401 = vmatpush1.bf16.msra.mxu0 %v5282_v3  ;;  %1573 = vmatpush1.bf16.msra.mxu1 %v5285_v4 }
  0xc0   :  { %1413 = vmatprep.subr.bf16.mxu0 %v5293_v5  ;;  %1585 = vmatprep.subr.bf16.mxu1 %v5296_v6 }
  0xc2   :  { %1403 = vmatmul.mubr.bf16.vlgmr.msra.gmra.mrb[0].mxu0 %v5288_v7  ;;  %1575 = vmatmul.mubr.bf16.vlgmr.msra.gmra.mrb[0].mxu1 %v5288_v7 }
  0xc3   :  { %1414 = vmatpush1.bf16.msra.mxu0 %v5291_v8  ;;  %1586 = vmatpush1.bf16.msra.mxu1 %v5294_v9 }
  0xc4   :  { %1445 = vmatprep.mubr.bf16.mxu0 %v5822_v11  ;;  %1617 = vmatprep.mubr.bf16.mxu1 %v5822_v11 }
  0xc5   :  { %2036 = vmatprep.subr.bf16.mxu0 %v5300_v10  ;;  %2349 = vmatprep.subr.bf16.mxu1 %v5396_v46  ;;  %v5381_v46 = vld [vmem:[%s7612_s4 + $0x1b4] ss:$8 sps:$4 sm:$0xff]  }
  0xce   :  { %4563 = vmatmul.mubr.msk.bf16.vlgmr.msra.gmra.mrb[0].mxu0 %vm1280_vm0, %v5297_v12  ;;  %4564 = vmatmul.mubr.msk.bf16.vlgmr.msra.gmra.mrb[0].mxu1 %vm1280_vm0, %v5297_v12 }
  0xcf   :  { %2037 = vmatpush1.bf16.msra.mxu0 %v5298_v13  ;;  %2381 = vmatprep.mubr.bf16.mxu1 %v5822_v11 }
  0xd0   :  { %2038 = vmatprep.subr.bf16.mxu0 %v5303_v14  ;;  %2350 = vmatpush1.bf16.msra.mxu1 %v5394_v45  ;;  %v5376_v45 = vld [vmem:[%s7612_s4 + $0x1a0] ss:$8 sps:$4 sm:$0xff]  }
  0xd1   :  { %2351 = vmatprep.subr.bf16.mxu1 %v5399_v48  ;;  %v5384_v48 = vld [vmem:[%s7612_s4 + $0x1c4] ss:$8 sps:$4 sm:$0xff]  }
  0xd3   :  { %2039 = vmatpush1.bf16.msra.mxu0 %v5301_v15 }
  0xd4   :  { %2040 = vmatprep.subr.bf16.mxu0 %v5306_v16  ;;  %2352 = vmatpush1.bf16.msra.mxu1 %v5397_v47  ;;  %v5379_v47 = vld [vmem:[%s7612_s4 + $0x1b0] ss:$8 sps:$4 sm:$0xff]  }
  0xd7   :  { %2041 = vmatpush1.bf16.msra.mxu0 %v5304_v17 }
  0xd8   :  { %2042 = vmatprep.subr.bf16.mxu0 %v5309_v18 }
  0xdb   :  { %2043 = vmatpush1.bf16.msra.mxu0 %v5307_v19 }
  0xdc   :  { %2044 = vmatprep.subr.bf16.mxu0 %v5312_v20 }
  0xdf   :  { %2045 = vmatpush1.bf16.msra.mxu0 %v5310_v21 }
  0xe0   :  { %2046 = vmatprep.subr.bf16.mxu0 %v5315_v22 }
  0xe3   :  { %2047 = vmatpush1.bf16.msra.mxu0 %v5313_v23 }
  0xe4   :  { %2048 = vmatprep.subr.bf16.mxu0 %v5318_v24 }
  0xe7   :  { %2049 = vmatpush1.bf16.msra.mxu0 %v5316_v25  ;;  %v5346_v25 = vld [vmem:[%s7612_s4 + $0x100] ss:$8 sps:$4 sm:$0xff]  }
  0xe8   :  { %2050 = vmatprep.subr.bf16.mxu0 %v5321_v26  ;;  %v5351_v26 = vld [vmem:[%s7612_s4 + $0x114] ss:$8 sps:$4 sm:$0xff]  }
  0xeb   :  { %2051 = vmatpush1.bf16.msra.mxu0 %v5319_v27  ;;  %v5349_v27 = vld [vmem:[%s7612_s4 + $0x110] ss:$8 sps:$4 sm:$0xff]  }
  0xec   :  { %2052 = vmatprep.subr.bf16.mxu0 %v5324_v28  ;;  %v5354_v28 = vld [vmem:[%s7612_s4 + $0x124] ss:$8 sps:$4 sm:$0xff]  }
  0xef   :  { %2053 = vmatpush1.bf16.msra.mxu0 %v5322_v29  ;;  %v5352_v29 = vld [vmem:[%s7612_s4 + $0x120] ss:$8 sps:$4 sm:$0xff]  }
  0xf0   :  { %2054 = vmatprep.subr.bf16.mxu0 %v5327_v30  ;;  %v5357_v30 = vld [vmem:[%s7612_s4 + $0x134] ss:$8 sps:$4 sm:$0xff]  }
  0xf3   :  { %2055 = vmatpush1.bf16.msra.mxu0 %v5325_v31  ;;  %v5355_v31 = vld [vmem:[%s7612_s4 + $0x130] ss:$8 sps:$4 sm:$0xff]  }
  0xf4   :  { %2056 = vmatprep.subr.bf16.mxu0 %v5330_v32  ;;  %v5360_v32 = vld [vmem:[%s7612_s4 + $0x144] ss:$8 sps:$4 sm:$0xff]  }
  0xf7   :  { %2057 = vmatpush1.bf16.msra.mxu0 %v5328_v33  ;;  %v5358_v33 = vld [vmem:[%s7612_s4 + $0x140] ss:$8 sps:$4 sm:$0xff]  }
  0xf8   :  { %2058 = vmatprep.subr.bf16.mxu0 %v5333_v34  ;;  %v5363_v34 = vld [vmem:[%s7612_s4 + $0x154] ss:$8 sps:$4 sm:$0xff]  }
  0xfb   :  { %2059 = vmatpush1.bf16.msra.mxu0 %v5331_v35  ;;  %v5361_v35 = vld [vmem:[%s7612_s4 + $0x150] ss:$8 sps:$4 sm:$0xff]  }
  0xfc   :  { %2060 = vmatprep.subr.bf16.mxu0 %v5336_v36  ;;  %v5366_v36 = vld [vmem:[%s7612_s4 + $0x164] ss:$8 sps:$4 sm:$0xff]  }
  0xff   :  { %2061 = vmatpush1.bf16.msra.mxu0 %v5334_v37  ;;  %v5364_v37 = vld [vmem:[%s7612_s4 + $0x160] ss:$8 sps:$4 sm:$0xff]  }
 0x100   :  { %2062 = vmatprep.subr.bf16.mxu0 %v5339_v38  ;;  %v5369_v38 = vld [vmem:[%s7612_s4 + $0x174] ss:$8 sps:$4 sm:$0xff]  }
 0x103   :  { %2063 = vmatpush1.bf16.msra.mxu0 %v5337_v39  ;;  %v5367_v39 = vld [vmem:[%s7612_s4 + $0x170] ss:$8 sps:$4 sm:$0xff]  }
 0x104   :  { %2064 = vmatprep.subr.bf16.mxu0 %v5342_v40  ;;  %v5372_v40 = vld [vmem:[%s7612_s4 + $0x184] ss:$8 sps:$4 sm:$0xff]  }
 0x107   :  { %2065 = vmatpush1.bf16.msra.mxu0 %v5340_v41  ;;  %v5370_v41 = vld [vmem:[%s7612_s4 + $0x180] ss:$8 sps:$4 sm:$0xff]  }
 0x108   :  { %2066 = vmatprep.subr.bf16.mxu0 %v5345_v42  ;;  %v5375_v42 = vld [vmem:[%s7612_s4 + $0x194] ss:$8 sps:$4 sm:$0xff]  }
 0x10b   :  { %2067 = vmatpush1.bf16.msra.mxu0 %v5343_v43  ;;  %v5373_v43 = vld [vmem:[%s7612_s4 + $0x190] ss:$8 sps:$4 sm:$0xff]  }
 0x10c   :  { %2079 = vmatprep.subr.bf16.mxu0 %v5348_v44  ;;  %v5378_v44 = vld [vmem:[%s7612_s4 + $0x1a4] ss:$8 sps:$4 sm:$0xff]  }
 0x1a1   :  { %v1447_v60 = vpop.f32.mrb[0].mxu0  ;;  %v1619_v61 = vpop.f32.mrb[0].mxu1 }
 0x1a2   :  { %v4929_v62 = vadd.f32 %v1447_v60, %v248_v56  ;;  %v4933_v63 = vadd.f32 %v1619_v61, %v256_v57  ;;  %v1449_v0 = vpop.f32.mrb[1].mxu0  ;;  %v1621_v1 = vpop.f32.mrb[1].mxu1  ;;  %v5391_v60 = vld [vmem:[%s7612_s4 + $0x1f0] ss:$8 sps:$4 sm:$0xff]   ;;  %v5402_v61 = vld [vmem:[%s7613_s6 + $0x44] ss:$16 sps:$4 sm:$0xff]  }
 0x1a3   :  { %v4930_v2 = vadd.f32 %v1449_v0, %v252_v58  ;;  %v4934_v3 = vadd.f32 %v1621_v1, %v260_v59  ;;  %v1451_v4 = vpop.f32.mrb[2].mxu0  ;;  %v1623_v5 = vpop.f32.mrb[2].mxu1  ;;  %2353 = vmatprep.subr.bf16.mxu1 %v5402_v61  ;;  %v5403_v0 = vld [vmem:[%s7613_s6 + $0x60] ss:$16 sps:$4 sm:$0xff]   ;;  %v5408_v1 = vld [vmem:[%s7613_s6 + $0x84] ss:$16 sps:$4 sm:$0xff]  }
 0x1a4   :  { %v4931_v6 = vadd.f32 %v1451_v4, %v248_v56  ;;  %v4935_v7 = vadd.f32 %v1623_v5, %v256_v57  ;;  %v1453_v8 = vpop.f32.mrb[3].mxu0  ;;  %v1625_v9 = vpop.f32.mrb[3].mxu1  ;;  %v1628_v13 = vmax.f32 %v4929_v62, 0.0  ;;  %v1630_v14 = vmax.f32 %v4933_v63, 0.0  ;;  %v5385_v56 = vld [vmem:[%s7612_s4 + $0x1d0] ss:$8 sps:$4 sm:$0xff]  }
 0x1a5   :  { %v4932_v10 = vadd.f32 %v1453_v8, %v252_v58  ;;  %v4936_v12 = vadd.f32 %v1625_v9, %v260_v59  ;;  %v1629_v17 = vmax.f32 %v4930_v2, 0.0  ;;  %v1631_v18 = vmax.f32 %v4934_v3, 0.0  ;;  %v5390_v57 = vld [vmem:[%s7612_s4 + $0x1e4] ss:$8 sps:$4 sm:$0xff]   ;;  %v5388_v58 = vld [vmem:[%s7612_s4 + $0x1e0] ss:$8 sps:$4 sm:$0xff]  }
 0x1a6   :  { %v1632_v15 = vmax.f32 %v4931_v6, 0.0  ;;  %v1634_v16 = vmax.f32 %v4935_v7, 0.0  ;;  %v5393_v59 = vld [vmem:[%s7612_s4 + $0x1f4] ss:$8 sps:$4 sm:$0xff]   ;;  %v5400_v62 = vld [vmem:[%s7613_s6 + $0x40] ss:$16 sps:$4 sm:$0xff]  }
 0x1a7   :  { %v1633_v19 = vmax.f32 %v4932_v10, 0.0  ;;  %v1635_v20 = vmax.f32 %v4936_v12, 0.0  ;;  %2354 = vmatpush1.bf16.msra.mxu1 %v5400_v62  ;;  %v5405_v63 = vld [vmem:[%s7613_s6 + $0x64] ss:$16 sps:$4 sm:$0xff]   ;;  %v5406_v2 = vld [vmem:[%s7613_s6 + $0x80] ss:$16 sps:$4 sm:$0xff]  }
 0x1a8   :  { %v1636_v21 = vpack.c.bf16 %v1632_v15, %v1628_v13  ;;  %v6634_v22 = vpack.c.bf16 %v1634_v16, %v1630_v14  ;;  %2355 = vmatprep.subr.bf16.mxu1 %v5405_v63  ;;  %v5411_v3 = vld [vmem:[%s7613_s6 + $0xa4] ss:$16 sps:$4 sm:$0xff]   ;;  %v5409_v4 = vld [vmem:[%s7613_s6 + $0xa0] ss:$16 sps:$4 sm:$0xff]   ;;  %v5420_v9 = vld [vmem:[%s7613_s6 + $0xc] ss:$16 sps:$4 sm:$0xff]  }
 0x1a9   :  { %v1637_v23 = vpack.c.bf16 %v1633_v19, %v1629_v17  ;;  %v1639_v24 = vpack.c.bf16 %v1635_v20, %v1631_v18  ;;  %v5414_v5 = vld [vmem:[%s7613_s6 + $0xc4] ss:$16 sps:$4 sm:$0xff]   ;;  %v5412_v6 = vld [vmem:[%s7613_s6 + $0xc0] ss:$16 sps:$4 sm:$0xff]   ;;  %v5447_v12 = vld [vmem:[%s7615_s8 + $0xc] ss:$28 sps:$4 sm:$0xff]  }
 0x1aa   :  { %v5417_v7 = vld [vmem:[%s7613_s6 + $0xe4] ss:$16 sps:$4 sm:$0xff]   ;;  %v5415_v8 = vld [vmem:[%s7613_s6 + $0xe0] ss:$16 sps:$4 sm:$0xff]   ;;  %v5459_v15 = vld [vmem:[%s7615_s8 + $0x7c] ss:$28 sps:$4 sm:$0xff]  }
 0x1ab   :  { %2068 = vmatprep.mubr.bf16.mxu0 %v1637_v23  ;;  %2356 = vmatpush1.bf16.msra.mxu1 %v5403_v0  ;;  %v5445_v10 = vld [vmem:[%s7615_s8 + $0x8] ss:$28 sps:$4 sm:$0xff]   ;;  %v5451_v13 = vld [vmem:[%s7615_s8 + $0x40] ss:$28 sps:$4 sm:$0xff]   ;;  %v5457_v16 = vld [vmem:[%s7615_s8 + $0x78] ss:$28 sps:$4 sm:$0xff]  }
 0x1ac   :  { %2069 = vmatmul.mubr.bf16.vlgmr.msra.gmra.mrb[4].mxu0 %v1636_v21  ;;  %2357 = vmatprep.subr.bf16.mxu1 %v5408_v1  ;;  %v5453_v14 = vld [vmem:[%s7615_s8 + $0x44] ss:$28 sps:$4 sm:$0xff]   ;;  %v5465_v17 = vld [vmem:[%s7615_s8 + $0xb4] ss:$28 sps:$4 sm:$0xff]   ;;  %v5471_v19 = vld [vmem:[%s7615_s8 + $0xec] ss:$28 sps:$4 sm:$0xff]  }
 0x1ad   :  { %2080 = vmatpush1.bf16.msra.mxu0 %v5346_v25  ;;  %2111 = vmatprep.mubr.bf16.mxu0 %v1639_v24  ;;  %v5463_v18 = vld [vmem:[%s7615_s8 + $0xb0] ss:$28 sps:$4 sm:$0xff]   ;;  %v5469_v20 = vld [vmem:[%s7615_s8 + $0xe8] ss:$28 sps:$4 sm:$0xff]   ;;  %v5483_v23 = vld [vmem:[%s7615_s8 + $0x15c] ss:$28 sps:$4 sm:$0xff]  }
 0x1ae   :  { %2081 = vmatprep.subr.bf16.mxu0 %v5351_v26  ;;  %v5477_v21 = vld [vmem:[%s7615_s8 + $0x124] ss:$28 sps:$4 sm:$0xff]   ;;  %v5481_v24 = vld [vmem:[%s7615_s8 + $0x158] ss:$28 sps:$4 sm:$0xff]   ;;  %v5487_v26 = vld [vmem:[%s7615_s8 + $0x190] ss:$28 sps:$4 sm:$0xff]  }
 0x1af   :  { %2358 = vmatpush1.bf16.msra.mxu1 %v5406_v2  ;;  %v5489_v25 = vld [vmem:[%s7615_s8 + $0x194] ss:$28 sps:$4 sm:$0xff]   ;;  %v5418_v2 = vld [vmem:[%s7613_s6 + $0x8] ss:$16 sps:$4 sm:$0xff]  }
 0x1b0   :  { %2359 = vmatprep.subr.bf16.mxu1 %v5411_v3 }
 0x1b1   :  { %2082 = vmatpush1.bf16.msra.mxu0 %v5349_v27  ;;  %v5495_v27 = vld [vmem:[%s7615_s8 + $0x1cc] ss:$28 sps:$4 sm:$0xff]  }
 0x1b2   :  { %2083 = vmatprep.subr.bf16.mxu0 %v5354_v28  ;;  %v5493_v28 = vld [vmem:[%s7615_s8 + $0x1c8] ss:$28 sps:$4 sm:$0xff]  }
 0x1b3   :  { %2360 = vmatpush1.bf16.msra.mxu1 %v5409_v4  ;;  %v5423_v4 = vld [vmem:[%s7613_s6 + $0x2c] ss:$16 sps:$4 sm:$0xff]  }
 0x1b4   :  { %2361 = vmatprep.subr.bf16.mxu1 %v5414_v5 }
 0x1b5   :  { %2084 = vmatpush1.bf16.msra.mxu0 %v5352_v29  ;;  %v5501_v29 = vld [vmem:[%s7615_s8 + $0x204] ss:$28 sps:$4 sm:$0xff]  }
 0x1b6   :  { %2085 = vmatprep.subr.bf16.mxu0 %v5357_v30  ;;  %v5499_v30 = vld [vmem:[%s7615_s8 + $0x200] ss:$28 sps:$4 sm:$0xff]  }
 0x1b7   :  { %2362 = vmatpush1.bf16.msra.mxu1 %v5412_v6  ;;  %v5421_v6 = vld [vmem:[%s7613_s6 + $0x28] ss:$16 sps:$4 sm:$0xff]  }
 0x1b8   :  { %2363 = vmatprep.subr.bf16.mxu1 %v5417_v7  ;;  %v5426_v7 = vld [vmem:[%s7613_s6 + $0x4c] ss:$16 sps:$4 sm:$0xff]  }
 0x1b9   :  { %2086 = vmatpush1.bf16.msra.mxu0 %v5355_v31  ;;  %v5507_v31 = vld [vmem:[%s7615_s8 + $0x23c] ss:$28 sps:$4 sm:$0xff]  }
 0x1ba   :  { %2087 = vmatprep.subr.bf16.mxu0 %v5360_v32  ;;  %v5505_v32 = vld [vmem:[%s7615_s8 + $0x238] ss:$28 sps:$4 sm:$0xff]  }
 0x1bb   :  { %2364 = vmatpush1.bf16.msra.mxu1 %v5415_v8  ;;  %v5424_v8 = vld [vmem:[%s7613_s6 + $0x48] ss:$16 sps:$4 sm:$0xff]  }
 0x1bc   :  { %2392 = vmatprep.subr.bf16.mxu1 %v5420_v9  ;;  %v5429_v9 = vld [vmem:[%s7613_s6 + $0x6c] ss:$16 sps:$4 sm:$0xff]  }
 0x1bd   :  { %2088 = vmatpush1.bf16.msra.mxu0 %v5358_v33  ;;  %v5513_v33 = vld [vmem:[%s7615_s8 + $0x274] ss:$28 sps:$4 sm:$0xff]  }
 0x1be   :  { %2089 = vmatprep.subr.bf16.mxu0 %v5363_v34  ;;  %v5511_v34 = vld [vmem:[%s7615_s8 + $0x270] ss:$28 sps:$4 sm:$0xff]  }
 0x1c1   :  { %2090 = vmatpush1.bf16.msra.mxu0 %v5361_v35  ;;  %v5519_v35 = vld [vmem:[%s7615_s8 + $0x2ac] ss:$28 sps:$4 sm:$0xff]  }
 0x1c2   :  { %2091 = vmatprep.subr.bf16.mxu0 %v5366_v36  ;;  %v5517_v36 = vld [vmem:[%s7615_s8 + $0x2a8] ss:$28 sps:$4 sm:$0xff]  }
 0x1c5   :  { %2092 = vmatpush1.bf16.msra.mxu0 %v5364_v37  ;;  %v5525_v37 = vld [vmem:[%s7615_s8 + $0x2e4] ss:$28 sps:$4 sm:$0xff]  }
 0x1c6   :  { %2093 = vmatprep.subr.bf16.mxu0 %v5369_v38  ;;  %v5523_v38 = vld [vmem:[%s7615_s8 + $0x2e0] ss:$28 sps:$4 sm:$0xff]  }
 0x1c9   :  { %2094 = vmatpush1.bf16.msra.mxu0 %v5367_v39  ;;  %v1704_v39 = vld [vmem:[%s7616_s5] sm:$0x3] }
 0x1ca   :  { %2095 = vmatprep.subr.bf16.mxu0 %v5372_v40  ;;  %v1709_v40 = vrot.slane %v1704_v39, %v6616_v51 }
 0x1cd   :  { %2096 = vmatpush1.bf16.msra.mxu0 %v5370_v41  ;;  %v1713_v41 = vrot.slane %v1704_v39, %v6625_v54  ;;  %v5504_v39 = vld [vmem:[%s7615_s8 + $0x234] ss:$28 sps:$4 sm:$0xff]  }
 0x1ce   :  { %2097 = vmatprep.subr.bf16.mxu0 %v5375_v42 }
 0x1d1   :  { %2098 = vmatpush1.bf16.msra.mxu0 %v5373_v43 }
 0x1d2   :  { %2099 = vmatprep.subr.bf16.mxu0 %v5378_v44 }
 0x1d5   :  { %2100 = vmatpush1.bf16.msra.mxu0 %v5376_v45 }
 0x1d6   :  { %2101 = vmatprep.subr.bf16.mxu0 %v5381_v46 }
 0x1d9   :  { %2102 = vmatpush1.bf16.msra.mxu0 %v5379_v47 }
 0x1da   :  { %2103 = vmatprep.subr.bf16.mxu0 %v5384_v48 }
 0x1dd   :  { %2104 = vmatpush1.bf16.msra.mxu0 %v5382_v49 }
 0x1de   :  { %2105 = vmatprep.subr.bf16.mxu0 %v5387_v53 }
 0x1e1   :  { %2106 = vmatpush1.bf16.msra.mxu0 %v5385_v56 }
 0x1e2   :  { %2107 = vmatprep.subr.bf16.mxu0 %v5390_v57 }
 0x1e5   :  { %2108 = vmatpush1.bf16.msra.mxu0 %v5388_v58 }
 0x1e6   :  { %2109 = vmatprep.subr.bf16.mxu0 %v5393_v59  ;;  %v2128_v59 = vld [vmem:[%s7619_s1] sm:$0xff] }
 0x1e9   :  { %2110 = vmatpush1.bf16.msra.mxu0 %v5391_v60  ;;  %v2129_v60 = vld [vmem:[%s7619_s1 + $0x8] sm:$0xff] }
 0x1ea   :  { %3978 = vmatprep.subr.bf16.mxu0 %v5447_v12  ;;  %v5430_v12 = vld [vmem:[%s7613_s6 + $0x88] ss:$16 sps:$4 sm:$0xff]  }
 0x1ec   :  { %2112 = vmatmul.mubr.bf16.vlgmr.msra.gmra.mrb[4].mxu0 %v6634_v22  ;;  %v5475_v22 = vld [vmem:[%s7615_s8 + $0x120] ss:$28 sps:$4 sm:$0xff]  }
 0x1ed   :  { %3979 = vmatpush1.bf16.msra.mxu0 %v5445_v10  ;;  %v5427_v10 = vld [vmem:[%s7613_s6 + $0x68] ss:$16 sps:$4 sm:$0xff]  }
 0x1ee   :  { %3980 = vmatprep.subr.bf16.mxu0 %v5453_v14  ;;  %v5433_v14 = vld [vmem:[%s7613_s6 + $0xa8] ss:$16 sps:$4 sm:$0xff]  }
 0x1f1   :  { %3981 = vmatpush1.bf16.msra.mxu0 %v5451_v13  ;;  %v5435_v13 = vld [vmem:[%s7613_s6 + $0xac] ss:$16 sps:$4 sm:$0xff]  }
 0x1f2   :  { %3982 = vmatprep.subr.bf16.mxu0 %v5459_v15  ;;  %v5438_v15 = vld [vmem:[%s7613_s6 + $0xcc] ss:$16 sps:$4 sm:$0xff]  }
 0x1f5   :  { %3983 = vmatpush1.bf16.msra.mxu0 %v5457_v16  ;;  %v5436_v16 = vld [vmem:[%s7613_s6 + $0xc8] ss:$16 sps:$4 sm:$0xff]  }
 0x1f6   :  { %3984 = vmatprep.subr.bf16.mxu0 %v5465_v17  ;;  %v5441_v17 = vld [vmem:[%s7613_s6 + $0xec] ss:$16 sps:$4 sm:$0xff]  }
 0x1f9   :  { %3985 = vmatpush1.bf16.msra.mxu0 %v5463_v18  ;;  %v5439_v18 = vld [vmem:[%s7613_s6 + $0xe8] ss:$16 sps:$4 sm:$0xff]  }
 0x1fa   :  { %3986 = vmatprep.subr.bf16.mxu0 %v5471_v19  ;;  %v5444_v19 = vld [vmem:[%s7615_s8 + $0x4] ss:$28 sps:$4 sm:$0xff]  }
 0x1fd   :  { %3987 = vmatpush1.bf16.msra.mxu0 %v5469_v20  ;;  %v5442_v20 = vld [vmem:[%s7615_s8] ss:$28 sps:$4 sm:$0xff]  }
 0x1fe   :  { %3988 = vmatprep.subr.bf16.mxu0 %v5477_v21  ;;  %v5450_v21 = vld [vmem:[%s7615_s8 + $0x3c] ss:$28 sps:$4 sm:$0xff]  }
 0x201   :  { %3989 = vmatpush1.bf16.msra.mxu0 %v5475_v22  ;;  %v5448_v22 = vld [vmem:[%s7615_s8 + $0x38] ss:$28 sps:$4 sm:$0xff]  }
 0x202   :  { %3990 = vmatprep.subr.bf16.mxu0 %v5483_v23  ;;  %v5456_v23 = vld [vmem:[%s7615_s8 + $0x74] ss:$28 sps:$4 sm:$0xff]  }
 0x205   :  { %3991 = vmatpush1.bf16.msra.mxu0 %v5481_v24  ;;  %v5454_v24 = vld [vmem:[%s7615_s8 + $0x70] ss:$28 sps:$4 sm:$0xff]  }
 0x206   :  { %3992 = vmatprep.subr.bf16.mxu0 %v5489_v25  ;;  %v5462_v25 = vld [vmem:[%s7615_s8 + $0xac] ss:$28 sps:$4 sm:$0xff]  }
 0x209   :  { %3993 = vmatpush1.bf16.msra.mxu0 %v5487_v26  ;;  %v5460_v26 = vld [vmem:[%s7615_s8 + $0xa8] ss:$28 sps:$4 sm:$0xff]  }
 0x20a   :  { %3994 = vmatprep.subr.bf16.mxu0 %v5495_v27  ;;  %v5468_v27 = vld [vmem:[%s7615_s8 + $0xe4] ss:$28 sps:$4 sm:$0xff]  }
 0x20d   :  { %3995 = vmatpush1.bf16.msra.mxu0 %v5493_v28  ;;  %v5466_v28 = vld [vmem:[%s7615_s8 + $0xe0] ss:$28 sps:$4 sm:$0xff]  }
 0x20e   :  { %3996 = vmatprep.subr.bf16.mxu0 %v5501_v29  ;;  %v5474_v29 = vld [vmem:[%s7615_s8 + $0x11c] ss:$28 sps:$4 sm:$0xff]  }
 0x211   :  { %3997 = vmatpush1.bf16.msra.mxu0 %v5499_v30  ;;  %v5472_v30 = vld [vmem:[%s7615_s8 + $0x118] ss:$28 sps:$4 sm:$0xff]  }
 0x212   :  { %3998 = vmatprep.subr.bf16.mxu0 %v5507_v31  ;;  %v5480_v31 = vld [vmem:[%s7615_s8 + $0x154] ss:$28 sps:$4 sm:$0xff]  }
 0x215   :  { %3999 = vmatpush1.bf16.msra.mxu0 %v5505_v32  ;;  %v5478_v32 = vld [vmem:[%s7615_s8 + $0x150] ss:$28 sps:$4 sm:$0xff]  }
 0x216   :  { %4000 = vmatprep.subr.bf16.mxu0 %v5513_v33  ;;  %v5486_v33 = vld [vmem:[%s7615_s8 + $0x18c] ss:$28 sps:$4 sm:$0xff]  }
 0x219   :  { %4001 = vmatpush1.bf16.msra.mxu0 %v5511_v34  ;;  %v5484_v34 = vld [vmem:[%s7615_s8 + $0x188] ss:$28 sps:$4 sm:$0xff]  }
 0x21a   :  { %4002 = vmatprep.subr.bf16.mxu0 %v5519_v35  ;;  %v5492_v35 = vld [vmem:[%s7615_s8 + $0x1c4] ss:$28 sps:$4 sm:$0xff]  }
 0x21d   :  { %4003 = vmatpush1.bf16.msra.mxu0 %v5517_v36  ;;  %v5490_v36 = vld [vmem:[%s7615_s8 + $0x1c0] ss:$28 sps:$4 sm:$0xff]  }
 0x21e   :  { %4004 = vmatprep.subr.bf16.mxu0 %v5525_v37  ;;  %v5498_v37 = vld [vmem:[%s7615_s8 + $0x1fc] ss:$28 sps:$4 sm:$0xff]  }
 0x221   :  { %4005 = vmatpush1.bf16.msra.mxu0 %v5523_v38  ;;  %v5496_v38 = vld [vmem:[%s7615_s8 + $0x1f8] ss:$28 sps:$4 sm:$0xff]  }
 0x2bf   :  { %v2113_v42 = vpop.f32.mrb[4].mxu0 }
 0x2c0   :  { %v4937_v43 = vadd.f32 %v2113_v42, %v1709_v40  ;;  %v2115_v44 = vpop.f32.mrb[5].mxu0  ;;  %v5508_v42 = vld [vmem:[%s7615_s8 + $0x268] ss:$28 sps:$4 sm:$0xff]  }
 0x2c1   :  { %v4938_v45 = vadd.f32 %v2115_v44, %v1713_v41  ;;  %v2117_v46 = vpop.f32.mrb[6].mxu0  ;;  %v5514_v44 = vld [vmem:[%s7615_s8 + $0x2a0] ss:$28 sps:$4 sm:$0xff]  }
 0x2c2   :  { %4344 = vst [vmem:[%s7617_s11] sm:$0xff] %v4937_v43  ;;  %v4939_v47 = vadd.f32 %v2117_v46, %v1709_v40  ;;  %v2119_v48 = vpop.f32.mrb[7].mxu0  ;;  %v5502_v40 = vld [vmem:[%s7615_s8 + $0x230] ss:$28 sps:$4 sm:$0xff]   ;;  %v5520_v46 = vld [vmem:[%s7615_s8 + $0x2d8] ss:$28 sps:$4 sm:$0xff]  }
 0x2c3   :  { %v2122_v49 = vmul.f32 0.5, %v4938_v45  ;;  %4346 = vst [vmem:[%s7618_s12] sm:$0xff] %v4938_v45  ;;  %v4940_v53 = vadd.f32 %v2119_v48, %v1713_v41  ;;  %v5510_v41 = vld [vmem:[%s7615_s8 + $0x26c] ss:$28 sps:$4 sm:$0xff]   ;;  %v5522_v45 = vld [vmem:[%s7615_s8 + $0x2dc] ss:$28 sps:$4 sm:$0xff]  }
 0x2c4   :  { %4345 = vst [vmem:[%s7617_s11 + $0x8] sm:$0xff] %v4939_v47  ;;  %v5531_v48 = vld [vmem:[%s7615_s8 + $0x31c] ss:$28 sps:$4 sm:$0xff]  }
 0x2c5   :  { %v2124_v56 = vmul.f32 1.442695, %v2122_v49  ;;  %v2123_v57 = vmul.f32 0.5, %v4940_v53  ;;  %4347 = vst [vmem:[%s7618_s12 + $0x8] sm:$0xff] %v4940_v53  ;;  %v5526_v49 = vld [vmem:[%s7615_s8 + $0x310] ss:$28 sps:$4 sm:$0xff]   ;;  %4006 = vmatprep.subr.bf16.mxu0 %v5531_v48 }
 0x2c6   :  { %v5529_v53 = vld [vmem:[%s7615_s8 + $0x318] ss:$28 sps:$4 sm:$0xff]  }
 0x2c7   :  { %5762 = vpow2.f32 %v2124_v56  ;;  %v2126_v58 = vmul.f32 1.442695, %v2123_v57  ;;  %4007 = vmatpush1.bf16.msra.mxu0 %v5529_v53  ;;  %v5534_v56 = vld [vmem:[%s7615_s8 + $0x34c] ss:$28 sps:$4 sm:$0xff]   ;;  %v5537_v57 = vld [vmem:[%s7615_s8 + $0x354] ss:$28 sps:$4 sm:$0xff]  }
 0x2c8   :  { %4008 = vmatprep.subr.bf16.mxu0 %v5537_v57 }
 0x2c9   :  { %5764 = vpow2.f32 %v2126_v58  ;;  %v5532_v58 = vld [vmem:[%s7615_s8 + $0x348] ss:$28 sps:$4 sm:$0xff]  }
 0x2d1   :  { %v5763_v61 = vpop.eup %5762 }
 0x2d2   :  { %v2130_v62 = vmul.f32 %v5763_v61, %v2128_v59  ;;  %v5535_v59 = vld [vmem:[%s7615_s8 + $0x350] ss:$28 sps:$4 sm:$0xff]  }
 0x2d3   :  { %v5765_v63 = vpop.eup %5764  ;;  %4009 = vmatpush1.bf16.msra.mxu0 %v5535_v59  ;;  %v5543_v61 = vld [vmem:[%s7615_s8 + $0x38c] ss:$28 sps:$4 sm:$0xff]  }
 0x2d4   :  { %v2131_v0 = vmul.f32 %v5765_v63, %v2129_v60  ;;  %v2132_v1 = vadd.f32 %v4937_v43, %v2130_v62  ;;  %v5516_v43 = vld [vmem:[%s7615_s8 + $0x2a4] ss:$28 sps:$4 sm:$0xff]   ;;  %4021 = vmatprep.subr.bf16.mxu0 %v5543_v61  ;;  %v5583_v59 = vld [vmem:[%s7615_s8 + $0x510] ss:$28 sps:$4 sm:$0xff]  }
 0x2d5   :  { %v5540_v60 = vld [vmem:[%s7615_s8 + $0x384] ss:$28 sps:$4 sm:$0xff]  }
 0x2d6   :  { %v2133_v3 = vadd.f32 %v4939_v47, %v2131_v0  ;;  %v5528_v47 = vld [vmem:[%s7615_s8 + $0x314] ss:$28 sps:$4 sm:$0xff]   ;;  %v7039_v62 = vld [vmem:[%s7620_s7] sm:$0xf] }
 0x2d7   :  { %v2172_v63 = vrot.slane %v7039_v62, %v6616_v51  ;;  %v2176_v0 = vrot.slane %v7039_v62, %v6625_v54 }
 0x2d8   :  { %v2134_v5 = vpack.c.bf16 %v2133_v3, %v2132_v1 }
 0x2da   :  { %2382 = vmatmul.mubr.bf16.vlgmr.msra.gmra.mrb[4].mxu1 %v2134_v5 }
 0x2db   :  { %2393 = vmatpush1.bf16.msra.mxu1 %v5418_v2  ;;  %2424 = vmatprep.mubr.bf16.mxu1 %v5822_v11  ;;  %v5432_v11 = vld [vmem:[%s7613_s6 + $0x8c] ss:$16 sps:$4 sm:$0xff]  }
 0x2dc   :  { %2394 = vmatprep.subr.bf16.mxu1 %v5423_v4 }
 0x2df   :  { %2395 = vmatpush1.bf16.msra.mxu1 %v5421_v6 }
 0x2e0   :  { %2396 = vmatprep.subr.bf16.mxu1 %v5426_v7 }
 0x2e3   :  { %2397 = vmatpush1.bf16.msra.mxu1 %v5424_v8 }
 0x2e4   :  { %2398 = vmatprep.subr.bf16.mxu1 %v5429_v9 }
 0x2e7   :  { %2399 = vmatpush1.bf16.msra.mxu1 %v5427_v10 }
 0x2e8   :  { %2400 = vmatprep.subr.bf16.mxu1 %v5432_v11 }
 0x2eb   :  { %2401 = vmatpush1.bf16.msra.mxu1 %v5430_v12 }
 0x2ec   :  { %2402 = vmatprep.subr.bf16.mxu1 %v5435_v13 }
 0x2ef   :  { %2403 = vmatpush1.bf16.msra.mxu1 %v5433_v14 }
 0x2f0   :  { %2404 = vmatprep.subr.bf16.mxu1 %v5438_v15  ;;  %v5538_v15 = vld [vmem:[%s7615_s8 + $0x380] ss:$28 sps:$4 sm:$0xff]  }
 0x2f3   :  { %2405 = vmatpush1.bf16.msra.mxu1 %v5436_v16  ;;  %v5541_v16 = vld [vmem:[%s7615_s8 + $0x388] ss:$28 sps:$4 sm:$0xff]  }
 0x2f4   :  { %2406 = vmatprep.subr.bf16.mxu1 %v5441_v17  ;;  %v5546_v17 = vld [vmem:[%s7615_s8 + $0x3bc] ss:$28 sps:$4 sm:$0xff]  }
 0x2f7   :  { %2407 = vmatpush1.bf16.msra.mxu1 %v5439_v18  ;;  %v5549_v18 = vld [vmem:[%s7615_s8 + $0x3c4] ss:$28 sps:$4 sm:$0xff]  }
 0x2f8   :  { %3892 = vmatprep.subr.bf16.mxu1 %v5444_v19  ;;  %v5544_v19 = vld [vmem:[%s7615_s8 + $0x3b8] ss:$28 sps:$4 sm:$0xff]  }
 0x2fa   :  { %2425 = vmatmul.mubr.bf16.vlgmr.msra.gmra.mrb[8].mxu1 %v2134_v5 }
 0x2fb   :  { %3893 = vmatpush1.bf16.msra.mxu1 %v5442_v20  ;;  %v5547_v20 = vld [vmem:[%s7615_s8 + $0x3c0] ss:$28 sps:$4 sm:$0xff]  }
 0x2fc   :  { %3894 = vmatprep.subr.bf16.mxu1 %v5450_v21  ;;  %v5552_v21 = vld [vmem:[%s7615_s8 + $0x3f4] ss:$28 sps:$4 sm:$0xff]  }
 0x2ff   :  { %3895 = vmatpush1.bf16.msra.mxu1 %v5448_v22  ;;  %v5555_v22 = vld [vmem:[%s7615_s8 + $0x3fc] ss:$28 sps:$4 sm:$0xff]  }
 0x300   :  { %3896 = vmatprep.subr.bf16.mxu1 %v5456_v23  ;;  %v5550_v23 = vld [vmem:[%s7615_s8 + $0x3f0] ss:$28 sps:$4 sm:$0xff]  }
 0x303   :  { %3897 = vmatpush1.bf16.msra.mxu1 %v5454_v24  ;;  %v5553_v24 = vld [vmem:[%s7615_s8 + $0x3f8] ss:$28 sps:$4 sm:$0xff]  }
 0x304   :  { %3898 = vmatprep.subr.bf16.mxu1 %v5462_v25  ;;  %v5558_v25 = vld [vmem:[%s7615_s8 + $0x42c] ss:$28 sps:$4 sm:$0xff]  }
 0x307   :  { %3899 = vmatpush1.bf16.msra.mxu1 %v5460_v26  ;;  %v5561_v26 = vld [vmem:[%s7615_s8 + $0x434] ss:$28 sps:$4 sm:$0xff]  }
 0x308   :  { %3900 = vmatprep.subr.bf16.mxu1 %v5468_v27  ;;  %v5556_v27 = vld [vmem:[%s7615_s8 + $0x428] ss:$28 sps:$4 sm:$0xff]  }
 0x30b   :  { %3901 = vmatpush1.bf16.msra.mxu1 %v5466_v28  ;;  %v5559_v28 = vld [vmem:[%s7615_s8 + $0x430] ss:$28 sps:$4 sm:$0xff]  }
 0x30c   :  { %3902 = vmatprep.subr.bf16.mxu1 %v5474_v29  ;;  %v5564_v29 = vld [vmem:[%s7615_s8 + $0x464] ss:$28 sps:$4 sm:$0xff]  }
 0x30f   :  { %3903 = vmatpush1.bf16.msra.mxu1 %v5472_v30  ;;  %v5567_v30 = vld [vmem:[%s7615_s8 + $0x46c] ss:$28 sps:$4 sm:$0xff]  }
 0x310   :  { %3904 = vmatprep.subr.bf16.mxu1 %v5480_v31  ;;  %v5562_v31 = vld [vmem:[%s7615_s8 + $0x460] ss:$28 sps:$4 sm:$0xff]  }
 0x313   :  { %3905 = vmatpush1.bf16.msra.mxu1 %v5478_v32  ;;  %v5565_v32 = vld [vmem:[%s7615_s8 + $0x468] ss:$28 sps:$4 sm:$0xff]  }
 0x314   :  { %3906 = vmatprep.subr.bf16.mxu1 %v5486_v33  ;;  %v5570_v33 = vld [vmem:[%s7615_s8 + $0x49c] ss:$28 sps:$4 sm:$0xff]  }
 0x317   :  { %3907 = vmatpush1.bf16.msra.mxu1 %v5484_v34  ;;  %v5573_v34 = vld [vmem:[%s7615_s8 + $0x4a4] ss:$28 sps:$4 sm:$0xff]  }
 0x318   :  { %3908 = vmatprep.subr.bf16.mxu1 %v5492_v35  ;;  %v5568_v35 = vld [vmem:[%s7615_s8 + $0x498] ss:$28 sps:$4 sm:$0xff]  }
 0x31b   :  { %3909 = vmatpush1.bf16.msra.mxu1 %v5490_v36  ;;  %v5571_v36 = vld [vmem:[%s7615_s8 + $0x4a0] ss:$28 sps:$4 sm:$0xff]  }
 0x31c   :  { %3910 = vmatprep.subr.bf16.mxu1 %v5498_v37  ;;  %v2180_v37 = vrot.slane %v7039_v62, %v6619_v52 }
 0x31f   :  { %3911 = vmatpush1.bf16.msra.mxu1 %v5496_v38  ;;  %v5576_v38 = vld [vmem:[%s7615_s8 + $0x4d4] ss:$28 sps:$4 sm:$0xff]  }
 0x320   :  { %3912 = vmatprep.subr.bf16.mxu1 %v5504_v39  ;;  %v5579_v39 = vld [vmem:[%s7615_s8 + $0x4dc] ss:$28 sps:$4 sm:$0xff]  }
 0x323   :  { %3913 = vmatpush1.bf16.msra.mxu1 %v5502_v40  ;;  %v2184_v40 = vrot.slane %v7039_v62, %v6628_v55  ;;  %v5588_v62 = vld [vmem:[%s7615_s8 + $0x544] ss:$28 sps:$4 sm:$0xff]  }
 0x324   :  { %3914 = vmatprep.subr.bf16.mxu1 %v5510_v41 }
 0x327   :  { %3915 = vmatpush1.bf16.msra.mxu1 %v5508_v42  ;;  %v5574_v42 = vld [vmem:[%s7615_s8 + $0x4d0] ss:$28 sps:$4 sm:$0xff]  }
 0x328   :  { %3916 = vmatprep.subr.bf16.mxu1 %v5516_v43  ;;  %v5577_v43 = vld [vmem:[%s7615_s8 + $0x4d8] ss:$28 sps:$4 sm:$0xff]  }
 0x32b   :  { %3917 = vmatpush1.bf16.msra.mxu1 %v5514_v44 }
 0x32c   :  { %3918 = vmatprep.subr.bf16.mxu1 %v5522_v45 }
 0x32f   :  { %3919 = vmatpush1.bf16.msra.mxu1 %v5520_v46  ;;  %v5582_v46 = vld [vmem:[%s7615_s8 + $0x50c] ss:$28 sps:$4 sm:$0xff]  }
 0x330   :  { %3920 = vmatprep.subr.bf16.mxu1 %v5528_v47  ;;  %v5585_v47 = vld [vmem:[%s7615_s8 + $0x514] ss:$28 sps:$4 sm:$0xff]  }
 0x333   :  { %3921 = vmatpush1.bf16.msra.mxu1 %v5526_v49 }
 0x334   :  { %3922 = vmatprep.subr.bf16.mxu1 %v5534_v56 }
 0x337   :  { %3923 = vmatpush1.bf16.msra.mxu1 %v5532_v58  ;;  %v5580_v58 = vld [vmem:[%s7615_s8 + $0x508] ss:$28 sps:$4 sm:$0xff]  }
 0x338   :  { %3935 = vmatprep.subr.bf16.mxu1 %v5540_v60 }
 0x3ad   :  { %v2383_v1 = vpop.f32.mrb[4].mxu1 }
 0x3ae   :  { %v2384_v2 = vadd.f32 %v2383_v1, %v2172_v63  ;;  %v2385_v3 = vpop.f32.mrb[5].mxu1 }
 0x3af   :  { %v2386_v4 = vadd.f32 %v2385_v3, %v2176_v0  ;;  %v2387_v5 = vpop.f32.mrb[6].mxu1 }
 0x3b0   :  { %v2388_v6 = vadd.f32 %v2387_v5, %v2172_v63  ;;  %v2389_v7 = vpop.f32.mrb[7].mxu1  ;;  %v2435_v9 = vmax.f32 %v2384_v2, 0.0  ;;  %v5591_v63 = vld [vmem:[%s7615_s8 + $0x54c] ss:$28 sps:$4 sm:$0xff]  }
 0x3b1   :  { %v2390_v8 = vadd.f32 %v2389_v7, %v2176_v0  ;;  %v2436_v11 = vmax.f32 %v2386_v4, 0.0  ;;  %v5586_v4 = vld [vmem:[%s7615_s8 + $0x540] ss:$28 sps:$4 sm:$0xff]   ;;  %v5589_v5 = vld [vmem:[%s7615_s8 + $0x548] ss:$28 sps:$4 sm:$0xff]  }
 0x3b2   :  { %v2439_v10 = vmax.f32 %v2388_v6, 0.0  ;;  %v5594_v6 = vld [vmem:[%s7615_s8 + $0x57c] ss:$28 sps:$4 sm:$0xff]   ;;  %v5597_v7 = vld [vmem:[%s7615_s8 + $0x584] ss:$28 sps:$4 sm:$0xff]  }
 0x3b3   :  { %v2440_v12 = vmax.f32 %v2390_v8, 0.0  ;;  %v5592_v8 = vld [vmem:[%s7615_s8 + $0x578] ss:$28 sps:$4 sm:$0xff]  }
 0x3b4   :  { %v7045_v13 = vpack.c.bf16 %v2439_v10, %v2435_v9  ;;  %v5595_v9 = vld [vmem:[%s7615_s8 + $0x580] ss:$28 sps:$4 sm:$0xff]   ;;  %v5600_v10 = vld [vmem:[%s7615_s8 + $0x5b4] ss:$28 sps:$4 sm:$0xff]  }
 0x3b5   :  { %v7047_v14 = vpack.c.bf16 %v2440_v12, %v2436_v11  ;;  %v5603_v11 = vld [vmem:[%s7615_s8 + $0x5bc] ss:$28 sps:$4 sm:$0xff]   ;;  %v5598_v12 = vld [vmem:[%s7615_s8 + $0x5b0] ss:$28 sps:$4 sm:$0xff]  }
 0x3b7   :  { %3924 = vmatprep.mubr.bf16.mxu1 %v7047_v14  ;;  %4010 = vmatprep.mubr.bf16.mxu0 %v7047_v14 }
 0x3b8   :  { %3925 = vmatmul.mubr.bf16.vlgmr.msra.gmra.mrb[12].mxu1 %v7045_v13  ;;  %4011 = vmatmul.mubr.bf16.vlgmr.msra.gmra.mrb[8].mxu0 %v7045_v13 }
 0x3b9   :  { %3936 = vmatpush1.bf16.msra.mxu1 %v5538_v15  ;;  %4022 = vmatpush1.bf16.msra.mxu0 %v5541_v16  ;;  %v5601_v15 = vld [vmem:[%s7615_s8 + $0x5b8] ss:$28 sps:$4 sm:$0xff]   ;;  %v5606_v16 = vld [vmem:[%s7615_s8 + $0x5ec] ss:$28 sps:$4 sm:$0xff]  }
 0x3ba   :  { %3937 = vmatprep.subr.bf16.mxu1 %v5546_v17  ;;  %4023 = vmatprep.subr.bf16.mxu0 %v5549_v18  ;;  %v5609_v17 = vld [vmem:[%s7615_s8 + $0x5f4] ss:$28 sps:$4 sm:$0xff]   ;;  %v5604_v18 = vld [vmem:[%s7615_s8 + $0x5e8] ss:$28 sps:$4 sm:$0xff]  }
 0x3bd   :  { %3938 = vmatpush1.bf16.msra.mxu1 %v5544_v19  ;;  %4024 = vmatpush1.bf16.msra.mxu0 %v5547_v20  ;;  %v5607_v19 = vld [vmem:[%s7615_s8 + $0x5f0] ss:$28 sps:$4 sm:$0xff]   ;;  %v5612_v20 = vld [vmem:[%s7615_s8 + $0x624] ss:$28 sps:$4 sm:$0xff]  }
 0x3be   :  { %3939 = vmatprep.subr.bf16.mxu1 %v5552_v21  ;;  %4025 = vmatprep.subr.bf16.mxu0 %v5555_v22  ;;  %v5615_v21 = vld [vmem:[%s7615_s8 + $0x62c] ss:$28 sps:$4 sm:$0xff]   ;;  %v5610_v22 = vld [vmem:[%s7615_s8 + $0x620] ss:$28 sps:$4 sm:$0xff]  }
 0x3c1   :  { %3940 = vmatpush1.bf16.msra.mxu1 %v5550_v23  ;;  %4026 = vmatpush1.bf16.msra.mxu0 %v5553_v24  ;;  %v5613_v23 = vld [vmem:[%s7615_s8 + $0x628] ss:$28 sps:$4 sm:$0xff]   ;;  %v5618_v24 = vld [vmem:[%s7615_s8 + $0x65c] ss:$28 sps:$4 sm:$0xff]  }
 0x3c2   :  { %3941 = vmatprep.subr.bf16.mxu1 %v5558_v25  ;;  %4027 = vmatprep.subr.bf16.mxu0 %v5561_v26  ;;  %v5621_v25 = vld [vmem:[%s7615_s8 + $0x664] ss:$28 sps:$4 sm:$0xff]   ;;  %v5616_v26 = vld [vmem:[%s7615_s8 + $0x658] ss:$28 sps:$4 sm:$0xff]  }
 0x3c5   :  { %3942 = vmatpush1.bf16.msra.mxu1 %v5556_v27  ;;  %4028 = vmatpush1.bf16.msra.mxu0 %v5559_v28  ;;  %v5619_v27 = vld [vmem:[%s7615_s8 + $0x660] ss:$28 sps:$4 sm:$0xff]   ;;  %v5624_v28 = vld [vmem:[%s7615_s8 + $0x694] ss:$28 sps:$4 sm:$0xff]  }
 0x3c6   :  { %3943 = vmatprep.subr.bf16.mxu1 %v5564_v29  ;;  %4029 = vmatprep.subr.bf16.mxu0 %v5567_v30  ;;  %v5627_v29 = vld [vmem:[%s7615_s8 + $0x69c] ss:$28 sps:$4 sm:$0xff]   ;;  %v5622_v30 = vld [vmem:[%s7615_s8 + $0x690] ss:$28 sps:$4 sm:$0xff]  }
 0x3c9   :  { %3944 = vmatpush1.bf16.msra.mxu1 %v5562_v31  ;;  %4030 = vmatpush1.bf16.msra.mxu0 %v5565_v32  ;;  %v5625_v31 = vld [vmem:[%s7615_s8 + $0x698] ss:$28 sps:$4 sm:$0xff]   ;;  %v5630_v32 = vld [vmem:[%s7615_s8 + $0x6cc] ss:$28 sps:$4 sm:$0xff]  }
 0x3ca   :  { %3945 = vmatprep.subr.bf16.mxu1 %v5570_v33  ;;  %4031 = vmatprep.subr.bf16.mxu0 %v5573_v34  ;;  %v5633_v33 = vld [vmem:[%s7615_s8 + $0x6d4] ss:$28 sps:$4 sm:$0xff]   ;;  %v5628_v34 = vld [vmem:[%s7615_s8 + $0x6c8] ss:$28 sps:$4 sm:$0xff]  }
 0x3cd   :  { %v2426_v41 = vpop.f32.mrb[8].mxu1  ;;  %3946 = vmatpush1.bf16.msra.mxu1 %v5568_v35  ;;  %4032 = vmatpush1.bf16.msra.mxu0 %v5571_v36  ;;  %v5631_v35 = vld [vmem:[%s7615_s8 + $0x6d0] ss:$28 sps:$4 sm:$0xff]  }
 0x3ce   :  { %v2427_v44 = vadd.f32 %v2426_v41, %v2180_v37  ;;  %v2428_v45 = vpop.f32.mrb[9].mxu1  ;;  %3947 = vmatprep.subr.bf16.mxu1 %v5576_v38  ;;  %4033 = vmatprep.subr.bf16.mxu0 %v5579_v39  ;;  %v5636_v36 = vld [vmem:[%s7615_s8 + $0x14] ss:$28 sps:$4 sm:$0xff]  }
 0x3cf   :  { %v2429_v48 = vadd.f32 %v2428_v45, %v2184_v40  ;;  %v2430_v49 = vpop.f32.mrb[10].mxu1  ;;  %v5634_v38 = vld [vmem:[%s7615_s8 + $0x10] ss:$28 sps:$4 sm:$0xff]   ;;  %v5638_v39 = vld [vmem:[%s7615_s8 + $0x18] ss:$28 sps:$4 sm:$0xff]  }
 0x3d0   :  { %v2431_v53 = vadd.f32 %v2430_v49, %v2180_v37  ;;  %v2432_v56 = vpop.f32.mrb[11].mxu1  ;;  %v2437_v60 = vmax.f32 %v2427_v44, 0.0  ;;  %v5637_v37 = vld [vmem:[%s7615_s8 + $0x1d8] ss:$28 sps:$4 sm:$0xff]   ;;  %v5642_v41 = vld [vmem:[%s7615_s8 + $0x210] ss:$28 sps:$4 sm:$0xff]  }
 0x3d1   :  { %v2433_v57 = vadd.f32 %v2432_v56, %v2184_v40  ;;  %3948 = vmatpush1.bf16.msra.mxu1 %v5574_v42  ;;  %4034 = vmatpush1.bf16.msra.mxu0 %v5577_v43  ;;  %v2438_v0 = vmax.f32 %v2429_v48, 0.0  ;;  %v5641_v40 = vld [vmem:[%s7615_s8 + $0x4c] ss:$28 sps:$4 sm:$0xff]   ;;  %v5646_v44 = vld [vmem:[%s7615_s8 + $0x84] ss:$28 sps:$4 sm:$0xff]  }
 0x3d2   :  { %v2441_v61 = vmax.f32 %v2431_v53, 0.0  ;;  %3949 = vmatprep.subr.bf16.mxu1 %v5582_v46  ;;  %4035 = vmatprep.subr.bf16.mxu0 %v5585_v47  ;;  %v5639_v42 = vld [vmem:[%s7615_s8 + $0x48] ss:$28 sps:$4 sm:$0xff]   ;;  %v5643_v43 = vld [vmem:[%s7615_s8 + $0x50] ss:$28 sps:$4 sm:$0xff]  }
 0x3d3   :  { %v2442_v1 = vmax.f32 %v2433_v57, 0.0  ;;  %v5647_v45 = vld [vmem:[%s7615_s8 + $0x248] ss:$28 sps:$4 sm:$0xff]   ;;  %v5644_v46 = vld [vmem:[%s7615_s8 + $0x80] ss:$28 sps:$4 sm:$0xff]  }
 0x3d4   :  { %v7153_v2 = vpack.c.bf16 %v2441_v61, %v2437_v60  ;;  %v5651_v47 = vld [vmem:[%s7615_s8 + $0xbc] ss:$28 sps:$4 sm:$0xff]   ;;  %v5656_v56 = vld [vmem:[%s7615_s8 + $0xf4] ss:$28 sps:$4 sm:$0xff]   ;;  %v5661_v60 = vld [vmem:[%s7615_s8 + $0x12c] ss:$28 sps:$4 sm:$0xff]  }
 0x3d5   :  { %v7155_v3 = vpack.c.bf16 %v2442_v1, %v2438_v0  ;;  %3950 = vmatpush1.bf16.msra.mxu1 %v5580_v58  ;;  %4036 = vmatpush1.bf16.msra.mxu0 %v5583_v59  ;;  %v5652_v48 = vld [vmem:[%s7615_s8 + $0x280] ss:$28 sps:$4 sm:$0xff]   ;;  %v5649_v49 = vld [vmem:[%s7615_s8 + $0xb8] ss:$28 sps:$4 sm:$0xff]   ;;  %v5654_v58 = vld [vmem:[%s7615_s8 + $0xf0] ss:$28 sps:$4 sm:$0xff]  }
 0x3d6   :  { %3951 = vmatprep.subr.bf16.mxu1 %v5588_v62  ;;  %4037 = vmatprep.subr.bf16.mxu0 %v5591_v63  ;;  %v5653_v53 = vld [vmem:[%s7615_s8 + $0xc0] ss:$28 sps:$4 sm:$0xff]   ;;  %v5657_v57 = vld [vmem:[%s7615_s8 + $0x2b8] ss:$28 sps:$4 sm:$0xff]   ;;  %v5662_v61 = vld [vmem:[%s7615_s8 + $0x2f0] ss:$28 sps:$4 sm:$0xff]  }
 0x3d7   :  { %3967 = vmatprep.mubr.bf16.mxu1 %v7155_v3  ;;  %4053 = vmatprep.mubr.bf16.mxu0 %v7155_v3  ;;  %v5658_v59 = vld [vmem:[%s7615_s8 + $0xf8] ss:$28 sps:$4 sm:$0xff]   ;;  %v5659_v62 = vld [vmem:[%s7615_s8 + $0x128] ss:$28 sps:$4 sm:$0xff]   ;;  %v5663_v63 = vld [vmem:[%s7615_s8 + $0x130] ss:$28 sps:$4 sm:$0xff]  }
 0x3d8   :  { %v5666_v0 = vld [vmem:[%s7615_s8 + $0x164] ss:$28 sps:$4 sm:$0xff]  }
 0x3d9   :  { %3952 = vmatpush1.bf16.msra.mxu1 %v5586_v4  ;;  %4038 = vmatpush1.bf16.msra.mxu0 %v5589_v5  ;;  %v5667_v1 = vld [vmem:[%s7615_s8 + $0x328] ss:$28 sps:$4 sm:$0xff]   ;;  %v5664_v4 = vld [vmem:[%s7615_s8 + $0x160] ss:$28 sps:$4 sm:$0xff]  }
 0x3da   :  { %3953 = vmatprep.subr.bf16.mxu1 %v5594_v6  ;;  %4039 = vmatprep.subr.bf16.mxu0 %v5597_v7  ;;  %v5668_v5 = vld [vmem:[%s7615_s8 + $0x168] ss:$28 sps:$4 sm:$0xff]   ;;  %v5671_v6 = vld [vmem:[%s7615_s8 + $0x19c] ss:$28 sps:$4 sm:$0xff]  }
 0x3db   :  { %v5672_v7 = vld [vmem:[%s7615_s8 + $0x360] ss:$28 sps:$4 sm:$0xff]  }
 0x3dd   :  { %3954 = vmatpush1.bf16.msra.mxu1 %v5592_v8  ;;  %4040 = vmatpush1.bf16.msra.mxu0 %v5595_v9  ;;  %v5669_v8 = vld [vmem:[%s7615_s8 + $0x198] ss:$28 sps:$4 sm:$0xff]   ;;  %v5673_v9 = vld [vmem:[%s7615_s8 + $0x1a0] ss:$28 sps:$4 sm:$0xff]  }
 0x3de   :  { %3955 = vmatprep.subr.bf16.mxu1 %v5600_v10  ;;  %4041 = vmatprep.subr.bf16.mxu0 %v5603_v11  ;;  %v5676_v10 = vld [vmem:[%s7615_s8 + $0x1d4] ss:$28 sps:$4 sm:$0xff]  }
 0x3df   :  { %v5677_v11 = vld [vmem:[%s7615_s8 + $0x558] ss:$28 sps:$4 sm:$0xff]  }
 0x3e1   :  { %3956 = vmatpush1.bf16.msra.mxu1 %v5598_v12  ;;  %4042 = vmatpush1.bf16.msra.mxu0 %v5601_v15  ;;  %v5674_v12 = vld [vmem:[%s7615_s8 + $0x1d0] ss:$28 sps:$4 sm:$0xff]   ;;  %v5678_v15 = vld [vmem:[%s7615_s8 + $0x398] ss:$28 sps:$4 sm:$0xff]  }
 0x3e2   :  { %3957 = vmatprep.subr.bf16.mxu1 %v5606_v16  ;;  %4043 = vmatprep.subr.bf16.mxu0 %v5609_v17  ;;  %v5681_v16 = vld [vmem:[%s7615_s8 + $0x20c] ss:$28 sps:$4 sm:$0xff]  }
 0x3e3   :  { %v5682_v17 = vld [vmem:[%s7615_s8 + $0x590] ss:$28 sps:$4 sm:$0xff]  }
 0x3e5   :  { %3958 = vmatpush1.bf16.msra.mxu1 %v5604_v18  ;;  %4044 = vmatpush1.bf16.msra.mxu0 %v5607_v19  ;;  %v5679_v18 = vld [vmem:[%s7615_s8 + $0x208] ss:$28 sps:$4 sm:$0xff]   ;;  %v5683_v19 = vld [vmem:[%s7615_s8 + $0x3d0] ss:$28 sps:$4 sm:$0xff]  }
 0x3e6   :  { %3959 = vmatprep.subr.bf16.mxu1 %v5612_v20  ;;  %4045 = vmatprep.subr.bf16.mxu0 %v5615_v21  ;;  %v5686_v20 = vld [vmem:[%s7615_s8 + $0x244] ss:$28 sps:$4 sm:$0xff]  }
 0x3e7   :  { %v5687_v21 = vld [vmem:[%s7615_s8 + $0x5c8] ss:$28 sps:$4 sm:$0xff]  }
 0x3e9   :  { %3960 = vmatpush1.bf16.msra.mxu1 %v5610_v22  ;;  %4046 = vmatpush1.bf16.msra.mxu0 %v5613_v23  ;;  %v5684_v22 = vld [vmem:[%s7615_s8 + $0x240] ss:$28 sps:$4 sm:$0xff]   ;;  %v5688_v23 = vld [vmem:[%s7615_s8 + $0x408] ss:$28 sps:$4 sm:$0xff]  }
 0x3ea   :  { %3961 = vmatprep.subr.bf16.mxu1 %v5618_v24  ;;  %4047 = vmatprep.subr.bf16.mxu0 %v5621_v25  ;;  %v5691_v24 = vld [vmem:[%s7615_s8 + $0x27c] ss:$28 sps:$4 sm:$0xff]  }
 0x3eb   :  { %v5692_v25 = vld [vmem:[%s7615_s8 + $0x600] ss:$28 sps:$4 sm:$0xff]  }
 0x3ed   :  { %3962 = vmatpush1.bf16.msra.mxu1 %v5616_v26  ;;  %4048 = vmatpush1.bf16.msra.mxu0 %v5619_v27  ;;  %v5689_v26 = vld [vmem:[%s7615_s8 + $0x278] ss:$28 sps:$4 sm:$0xff]   ;;  %v5693_v27 = vld [vmem:[%s7615_s8 + $0x440] ss:$28 sps:$4 sm:$0xff]  }
 0x3ee   :  { %3963 = vmatprep.subr.bf16.mxu1 %v5624_v28  ;;  %4049 = vmatprep.subr.bf16.mxu0 %v5627_v29  ;;  %v5696_v28 = vld [vmem:[%s7615_s8 + $0x2b4] ss:$28 sps:$4 sm:$0xff]  }
 0x3ef   :  { %v5697_v29 = vld [vmem:[%s7615_s8 + $0x638] ss:$28 sps:$4 sm:$0xff]  }
 0x3f1   :  { %3964 = vmatpush1.bf16.msra.mxu1 %v5622_v30  ;;  %4050 = vmatpush1.bf16.msra.mxu0 %v5625_v31  ;;  %v5694_v30 = vld [vmem:[%s7615_s8 + $0x2b0] ss:$28 sps:$4 sm:$0xff]   ;;  %v5698_v31 = vld [vmem:[%s7615_s8 + $0x478] ss:$28 sps:$4 sm:$0xff]  }
 0x3f2   :  { %3965 = vmatprep.subr.bf16.mxu1 %v5630_v32  ;;  %4051 = vmatprep.subr.bf16.mxu0 %v5633_v33  ;;  %v5701_v32 = vld [vmem:[%s7615_s8 + $0x2ec] ss:$28 sps:$4 sm:$0xff]  }
 0x3f3   :  { %v5702_v33 = vld [vmem:[%s7615_s8 + $0x670] ss:$28 sps:$4 sm:$0xff]  }
 0x3f5   :  { %3966 = vmatpush1.bf16.msra.mxu1 %v5628_v34  ;;  %4052 = vmatpush1.bf16.msra.mxu0 %v5631_v35  ;;  %v5699_v34 = vld [vmem:[%s7615_s8 + $0x2e8] ss:$28 sps:$4 sm:$0xff]   ;;  %v5703_v35 = vld [vmem:[%s7615_s8 + $0x4b0] ss:$28 sps:$4 sm:$0xff]  }
 0x3f6   :  { %4064 = vmatprep.subr.bf16.mxu1 %v5636_v36  ;;  %4885 = vmatprep.subr.bf16.mxu0 %v5637_v37  ;;  %v5706_v36 = vld [vmem:[%s7615_s8 + $0x324] ss:$28 sps:$4 sm:$0xff]  }
 0x3f7   :  { %v5707_v37 = vld [vmem:[%s7615_s8 + $0x6a8] ss:$28 sps:$4 sm:$0xff]  }
 0x3f8   :  { %3968 = vmatmul.mubr.bf16.vlgmr.msra.gmra.mrb[12].mxu1 %v7153_v2  ;;  %4054 = vmatmul.mubr.bf16.vlgmr.msra.gmra.mrb[8].mxu0 %v7153_v2 }
 0x3f9   :  { %4065 = vmatpush1.bf16.msra.mxu1 %v5634_v38  ;;  %4096 = vmatprep.mubr.bf16.mxu1 %v7047_v14  ;;  %v5704_v38 = vld [vmem:[%s7615_s8 + $0x320] ss:$28 sps:$4 sm:$0xff]  }
 0x3fa   :  { %4886 = vmatpush3.bf16.msra.mxu0 %v5638_v39  ;;  %4182 = vmatprep.mubr.bf16.mxu0 %v7047_v14  ;;  %v5648_v14 = vld [vmem:[%s7615_s8 + $0x88] ss:$28 sps:$4 sm:$0xff]  }
 0x3fb   :  { %4066 = vmatprep.subr.bf16.mxu1 %v5641_v40  ;;  %4887 = vmatprep.subr.bf16.mxu0 %v5642_v41  ;;  %v5708_v39 = vld [vmem:[%s7615_s8 + $0x4e8] ss:$28 sps:$4 sm:$0xff]   ;;  %v5711_v40 = vld [vmem:[%s7615_s8 + $0x35c] ss:$28 sps:$4 sm:$0xff]  }
 0x3fc   :  { %v5712_v41 = vld [vmem:[%s7615_s8 + $0x6e0] ss:$28 sps:$4 sm:$0xff]  }
 0x3fd   :  { %4067 = vmatpush1.bf16.msra.mxu1 %v5639_v42  ;;  %v5709_v42 = vld [vmem:[%s7615_s8 + $0x358] ss:$28 sps:$4 sm:$0xff]  }
 0x3fe   :  { %4888 = vmatpush3.bf16.msra.mxu0 %v5643_v43  ;;  %4068 = vmatprep.subr.bf16.mxu1 %v5646_v44  ;;  %v5713_v43 = vld [vmem:[%s7615_s8 + $0x520] ss:$28 sps:$4 sm:$0xff]   ;;  %v5716_v44 = vld [vmem:[%s7615_s8 + $0x394] ss:$28 sps:$4 sm:$0xff]  }
 0x3ff   :  { %4889 = vmatprep.subr.bf16.mxu0 %v5647_v45  ;;  %v5714_v45 = vld [vmem:[%s7615_s8 + $0x390] ss:$28 sps:$4 sm:$0xff]  }
 0x401   :  { %4069 = vmatpush1.bf16.msra.mxu1 %v5644_v46  ;;  %v5719_v46 = vld [vmem:[%s7615_s8 + $0x3cc] ss:$28 sps:$4 sm:$0xff]  }
 0x402   :  { %4890 = vmatpush3.bf16.msra.mxu0 %v5648_v14  ;;  %4070 = vmatprep.subr.bf16.mxu1 %v5651_v47  ;;  %v5717_v14 = vld [vmem:[%s7615_s8 + $0x3c8] ss:$28 sps:$4 sm:$0xff]  }
 0x403   :  { %4891 = vmatprep.subr.bf16.mxu0 %v5652_v48  ;;  %v5722_v47 = vld [vmem:[%s7615_s8 + $0x404] ss:$28 sps:$4 sm:$0xff]  }
 0x404   :  { %v5720_v48 = vld [vmem:[%s7615_s8 + $0x400] ss:$28 sps:$4 sm:$0xff]  }
 0x405   :  { %4071 = vmatpush1.bf16.msra.mxu1 %v5649_v49  ;;  %v5728_v49 = vld [vmem:[%s7615_s8 + $0x474] ss:$28 sps:$4 sm:$0xff]  }
 0x406   :  { %4892 = vmatpush3.bf16.msra.mxu0 %v5653_v53  ;;  %4072 = vmatprep.subr.bf16.mxu1 %v5656_v56  ;;  %v5726_v53 = vld [vmem:[%s7615_s8 + $0x470] ss:$28 sps:$4 sm:$0xff]  }
 0x407   :  { %4893 = vmatprep.subr.bf16.mxu0 %v5657_v57  ;;  %v5731_v56 = vld [vmem:[%s7615_s8 + $0x4ac] ss:$28 sps:$4 sm:$0xff]  }
 0x408   :  { %v5729_v57 = vld [vmem:[%s7615_s8 + $0x4a8] ss:$28 sps:$4 sm:$0xff]  }
 0x409   :  { %4073 = vmatpush1.bf16.msra.mxu1 %v5654_v58  ;;  %v5734_v58 = vld [vmem:[%s7615_s8 + $0x4e4] ss:$28 sps:$4 sm:$0xff]  }
 0x40a   :  { %4894 = vmatpush3.bf16.msra.mxu0 %v5658_v59  ;;  %4074 = vmatprep.subr.bf16.mxu1 %v5661_v60  ;;  %v5732_v59 = vld [vmem:[%s7615_s8 + $0x4e0] ss:$28 sps:$4 sm:$0xff]  }
 0x40b   :  { %4895 = vmatprep.subr.bf16.mxu0 %v5662_v61  ;;  %v5737_v60 = vld [vmem:[%s7615_s8 + $0x51c] ss:$28 sps:$4 sm:$0xff]  }
 0x40c   :  { %v5735_v61 = vld [vmem:[%s7615_s8 + $0x518] ss:$28 sps:$4 sm:$0xff]  }
 0x40d   :  { %4075 = vmatpush1.bf16.msra.mxu1 %v5659_v62  ;;  %v5740_v62 = vld [vmem:[%s7615_s8 + $0x554] ss:$28 sps:$4 sm:$0xff]  }
 0x40e   :  { %4896 = vmatpush3.bf16.msra.mxu0 %v5663_v63  ;;  %4076 = vmatprep.subr.bf16.mxu1 %v5666_v0  ;;  %v5738_v63 = vld [vmem:[%s7615_s8 + $0x550] ss:$28 sps:$4 sm:$0xff]  }
 0x40f   :  { %4897 = vmatprep.subr.bf16.mxu0 %v5667_v1  ;;  %v5743_v0 = vld [vmem:[%s7615_s8 + $0x58c] ss:$28 sps:$4 sm:$0xff]  }
 0x410   :  { %v5741_v1 = vld [vmem:[%s7615_s8 + $0x588] ss:$28 sps:$4 sm:$0xff]  }
 0x411   :  { %4077 = vmatpush1.bf16.msra.mxu1 %v5664_v4  ;;  %v5746_v4 = vld [vmem:[%s7615_s8 + $0x5c4] ss:$28 sps:$4 sm:$0xff]  }
 0x412   :  { %4898 = vmatpush3.bf16.msra.mxu0 %v5668_v5  ;;  %4078 = vmatprep.subr.bf16.mxu1 %v5671_v6  ;;  %v5744_v5 = vld [vmem:[%s7615_s8 + $0x5c0] ss:$28 sps:$4 sm:$0xff]  }
 0x413   :  { %4899 = vmatprep.subr.bf16.mxu0 %v5672_v7  ;;  %v5749_v6 = vld [vmem:[%s7615_s8 + $0x5fc] ss:$28 sps:$4 sm:$0xff]  }
 0x414   :  { %v5747_v7 = vld [vmem:[%s7615_s8 + $0x5f8] ss:$28 sps:$4 sm:$0xff]  }
 0x415   :  { %4079 = vmatpush1.bf16.msra.mxu1 %v5669_v8  ;;  %v5752_v8 = vld [vmem:[%s7615_s8 + $0x634] ss:$28 sps:$4 sm:$0xff]  }
 0x416   :  { %4900 = vmatpush3.bf16.msra.mxu0 %v5673_v9  ;;  %4080 = vmatprep.subr.bf16.mxu1 %v5676_v10  ;;  %v5750_v9 = vld [vmem:[%s7615_s8 + $0x630] ss:$28 sps:$4 sm:$0xff]  }
 0x417   :  { %4907 = vmatprep.subr.bf16.mxu0 %v5677_v11  ;;  %v5755_v10 = vld [vmem:[%s7615_s8 + $0x66c] ss:$28 sps:$4 sm:$0xff]  }
 0x418   :  { %v5753_v11 = vld [vmem:[%s7615_s8 + $0x668] ss:$28 sps:$4 sm:$0xff]  }
 0x419   :  { %4183 = vmatmul.mubr.bf16.vlgmr.msra.gmra.mrb[12].mxu0 %v7045_v13  ;;  %4081 = vmatpush1.bf16.msra.mxu1 %v5674_v12  ;;  %v5758_v12 = vld [vmem:[%s7615_s8 + $0x6a4] ss:$28 sps:$4 sm:$0xff]  }
 0x41a   :  { %4908 = vmatpush3.bf16.msra.mxu0 %v5678_v15  ;;  %4223 = vmatprep.mubr.bf16.mxu0 %v7155_v3  ;;  %v5756_v15 = vld [vmem:[%s7615_s8 + $0x6a0] ss:$28 sps:$4 sm:$0xff]  }
 0x41b   :  { %4082 = vmatprep.subr.bf16.mxu1 %v5681_v16  ;;  %4909 = vmatprep.subr.bf16.mxu0 %v5682_v17  ;;  %v5761_v16 = vld [vmem:[%s7615_s8 + $0x6dc] ss:$28 sps:$4 sm:$0xff]  }
 0x41c   :  { %v5759_v17 = vld [vmem:[%s7615_s8 + $0x6d8] ss:$28 sps:$4 sm:$0xff]  }
 0x41d   :  { %4083 = vmatpush1.bf16.msra.mxu1 %v5679_v18  ;;  %v7550_v18 = vld [vmem:[%s7621_s9] sm:$0x7f] }
 0x41e   :  { %4910 = vmatpush3.bf16.msra.mxu0 %v5683_v19  ;;  %4084 = vmatprep.subr.bf16.mxu1 %v5686_v20  ;;  %v2708_v19 = vrot.slane %v7550_v18, %v6616_v51  ;;  %v2716_v20 = vrot.slane %v7550_v18, %v6619_v52 }
 0x41f   :  { %4911 = vmatprep.subr.bf16.mxu0 %v5687_v21  ;;  %v2712_v21 = vrot.slane %v7550_v18, %v6625_v54 }
 0x421   :  { %4085 = vmatpush1.bf16.msra.mxu1 %v5684_v22  ;;  %v2720_v22 = vrot.slane %v7550_v18, %v6628_v55 }
 0x422   :  { %4912 = vmatpush3.bf16.msra.mxu0 %v5688_v23  ;;  %4086 = vmatprep.subr.bf16.mxu1 %v5691_v24 }
 0x423   :  { %4913 = vmatprep.subr.bf16.mxu0 %v5692_v25 }
 0x425   :  { %4087 = vmatpush1.bf16.msra.mxu1 %v5689_v26 }
 0x426   :  { %4914 = vmatpush3.bf16.msra.mxu0 %v5693_v27  ;;  %4088 = vmatprep.subr.bf16.mxu1 %v5696_v28 }
 0x427   :  { %4915 = vmatprep.subr.bf16.mxu0 %v5697_v29 }
 0x429   :  { %4089 = vmatpush1.bf16.msra.mxu1 %v5694_v30 }
 0x42a   :  { %4916 = vmatpush3.bf16.msra.mxu0 %v5698_v31  ;;  %4090 = vmatprep.subr.bf16.mxu1 %v5701_v32 }
 0x42b   :  { %4917 = vmatprep.subr.bf16.mxu0 %v5702_v33 }
 0x42d   :  { %4091 = vmatpush1.bf16.msra.mxu1 %v5699_v34 }
 0x42e   :  { %4918 = vmatpush3.bf16.msra.mxu0 %v5703_v35  ;;  %4092 = vmatprep.subr.bf16.mxu1 %v5706_v36 }
 0x42f   :  { %4919 = vmatprep.subr.bf16.mxu0 %v5707_v37 }
 0x431   :  { %4093 = vmatpush1.bf16.msra.mxu1 %v5704_v38 }
 0x432   :  { %4920 = vmatpush3.bf16.msra.mxu0 %v5708_v39  ;;  %4094 = vmatprep.subr.bf16.mxu1 %v5711_v40 }
 0x433   :  { %4921 = vmatprep.subr.bf16.mxu0 %v5712_v41 }
 0x435   :  { %4095 = vmatpush1.bf16.msra.mxu1 %v5709_v42 }
 0x436   :  { %4922 = vmatpush3.bf16.msra.mxu0 %v5713_v43  ;;  %4107 = vmatprep.subr.bf16.mxu1 %v5716_v44 }
 0x438   :  { %4097 = vmatmul.mubr.bf16.vlgmr.msra.gmra.mrb[16].mxu1 %v7045_v13  ;;  %v5725_v13 = vld [vmem:[%s7615_s8 + $0x43c] ss:$28 sps:$4 sm:$0xff]  }
 0x439   :  { %4224 = vmatmul.mubr.bf16.vlgmr.msra.gmra.mrb[16].mxu0 %v7153_v2  ;;  %4108 = vmatpush1.bf16.msra.mxu1 %v5714_v45 }
 0x43a   :  { %4139 = vmatprep.mubr.bf16.mxu1 %v7155_v3  ;;  %4109 = vmatprep.subr.bf16.mxu1 %v5719_v46  ;;  %v5723_v3 = vld [vmem:[%s7615_s8 + $0x438] ss:$28 sps:$4 sm:$0xff]  }
 0x43d   :  { %4110 = vmatpush1.bf16.msra.mxu1 %v5717_v14 }
 0x43e   :  { %4111 = vmatprep.subr.bf16.mxu1 %v5722_v47 }
 0x441   :  { %4112 = vmatpush1.bf16.msra.mxu1 %v5720_v48 }
 0x442   :  { %4113 = vmatprep.subr.bf16.mxu1 %v5725_v13 }
 0x445   :  { %4114 = vmatpush1.bf16.msra.mxu1 %v5723_v3 }
 0x446   :  { %4115 = vmatprep.subr.bf16.mxu1 %v5728_v49 }
 0x449   :  { %4116 = vmatpush1.bf16.msra.mxu1 %v5726_v53 }
 0x44a   :  { %4117 = vmatprep.subr.bf16.mxu1 %v5731_v56 }
 0x44d   :  { %4118 = vmatpush1.bf16.msra.mxu1 %v5729_v57 }
 0x44e   :  { %4119 = vmatprep.subr.bf16.mxu1 %v5734_v58 }
 0x451   :  { %4120 = vmatpush1.bf16.msra.mxu1 %v5732_v59 }
 0x452   :  { %4121 = vmatprep.subr.bf16.mxu1 %v5737_v60 }
 0x455   :  { %4122 = vmatpush1.bf16.msra.mxu1 %v5735_v61 }
 0x456   :  { %4123 = vmatprep.subr.bf16.mxu1 %v5740_v62 }
 0x459   :  { %4124 = vmatpush1.bf16.msra.mxu1 %v5738_v63 }
 0x45a   :  { %4125 = vmatprep.subr.bf16.mxu1 %v5743_v0 }
 0x45d   :  { %4126 = vmatpush1.bf16.msra.mxu1 %v5741_v1 }
 0x45e   :  { %4127 = vmatprep.subr.bf16.mxu1 %v5746_v4 }
 0x461   :  { %4128 = vmatpush1.bf16.msra.mxu1 %v5744_v5 }
 0x462   :  { %4129 = vmatprep.subr.bf16.mxu1 %v5749_v6 }
 0x465   :  { %4130 = vmatpush1.bf16.msra.mxu1 %v5747_v7 }
 0x466   :  { %4131 = vmatprep.subr.bf16.mxu1 %v5752_v8 }
 0x469   :  { %4132 = vmatpush1.bf16.msra.mxu1 %v5750_v9 }
 0x46a   :  { %4133 = vmatprep.subr.bf16.mxu1 %v5755_v10 }
 0x46d   :  { %4134 = vmatpush1.bf16.msra.mxu1 %v5753_v11 }
 0x46e   :  { %4135 = vmatprep.subr.bf16.mxu1 %v5758_v12 }
 0x471   :  { %4136 = vmatpush1.bf16.msra.mxu1 %v5756_v15 }
 0x472   :  { %4137 = vmatprep.subr.bf16.mxu1 %v5761_v16 }
 0x475   :  { %4138 = vmatpush1.bf16.msra.mxu1 %v5759_v17 }
 0x478   :  { %4140 = vmatmul.mubr.bf16.vlgmr.msra.gmra.mrb[16].mxu1 %v7153_v2 }
 0x4cb   :  { %v3969_v23 = vpop.f32.mrb[12].mxu1  ;;  %v4055_v24 = vpop.f32.mrb[8].mxu0 }
 0x4cc   :  { %v4941_v2 = vadd.f32 %v3969_v23, %v2708_v19  ;;  %v4945_v25 = vadd.f32 %v4055_v24, %v2716_v20  ;;  %v3971_v26 = vpop.f32.mrb[13].mxu1  ;;  %v4057_v27 = vpop.f32.mrb[9].mxu0 }
 0x4cd   :  { %v4942_v28 = vadd.f32 %v3971_v26, %v2712_v21  ;;  %v4946_v29 = vadd.f32 %v4057_v27, %v2720_v22  ;;  %v3973_v30 = vpop.f32.mrb[14].mxu1  ;;  %v4059_v31 = vpop.f32.mrb[10].mxu0 }
 0x4ce   :  { %v4232_v51 = vsub.f32 0.0, %v4941_v2  ;;  %v4234_v32 = vsub.f32 0.0, %v4945_v25  ;;  %v4943_v33 = vadd.f32 %v3973_v30, %v2708_v19  ;;  %v4947_v52 = vadd.f32 %v4059_v31, %v2716_v20  ;;  %v3975_v34 = vpop.f32.mrb[15].mxu1  ;;  %v4061_v35 = vpop.f32.mrb[11].mxu0 }
 0x4cf   :  { %v4233_v54 = vsub.f32 0.0, %v4942_v28  ;;  %v4235_v36 = vsub.f32 0.0, %v4946_v29  ;;  %v4944_v37 = vadd.f32 %v3975_v34, %v2712_v21  ;;  %v4948_v55 = vadd.f32 %v4061_v35, %v2720_v22 }
 0x4d0   :  { %v4246_v38 = vmul.f32 1.442695, %v4232_v51  ;;  %v4250_v39 = vmul.f32 1.442695, %v4234_v32  ;;  %v4239_v40 = vsub.f32 0.0, %v4943_v33  ;;  %v4241_v41 = vsub.f32 0.0, %v4947_v52 }
 0x4d1   :  { %v4248_v42 = vmul.f32 1.442695, %v4233_v54  ;;  %v4252_v43 = vmul.f32 1.442695, %v4235_v36  ;;  %v4240_v44 = vsub.f32 0.0, %v4944_v37  ;;  %v4242_v45 = vsub.f32 0.0, %v4948_v55 }
 0x4d2   :  { %5766 = vpow2.f32 %v4246_v38  ;;  %v4260_v46 = vmul.f32 1.442695, %v4239_v40  ;;  %v4264_v14 = vmul.f32 1.442695, %v4241_v41  ;;  %v2731_v54 = vsub.s32 6, %v6613_v50 }
 0x4d3   :  { %5768 = vpow2.f32 %v4250_v39  ;;  %v4262_v47 = vmul.f32 1.442695, %v4240_v44  ;;  %v4266_v48 = vmul.f32 1.442695, %v4242_v45 }
 0x4d4   :  { %5770 = vpow2.f32 %v4248_v42  ;;  %v2732_v36 = vrot.slane %v7550_v18, %v2731_v54 }
 0x4d5   :  { %5772 = vpow2.f32 %v4252_v43 }
 0x4d6   :  { %5774 = vpow2.f32 %v4260_v46 }
 0x4d7   :  { %5776 = vpow2.f32 %v4264_v14 }
 0x4d8   :  { %5778 = vpow2.f32 %v4262_v47 }
 0x4d9   :  { %5780 = vpow2.f32 %v4266_v48 }
 0x4dc   :  { %v5767_v13 = vpop.eup %5766 }
 0x4dd   :  { %v5769_v3 = vpop.eup %5768  ;;  %v4274_v49 = vadd.f32 1.0, %v5767_v13 }
 0x4de   :  { %v5771_v53 = vpop.eup %5770  ;;  %v4276_v56 = vadd.f32 1.0, %v5769_v3 }
 0x4df   :  { %v5773_v57 = vpop.eup %5772  ;;  %5782 = vrcp.f32 %v4274_v49  ;;  %v4275_v58 = vadd.f32 1.0, %v5771_v53 }
 0x4e0   :  { %v5775_v59 = vpop.eup %5774  ;;  %5784 = vrcp.f32 %v4276_v56  ;;  %v4277_v60 = vadd.f32 1.0, %v5773_v57 }
 0x4e1   :  { %v5777_v61 = vpop.eup %5776  ;;  %5786 = vrcp.f32 %v4275_v58  ;;  %v4281_v62 = vadd.f32 1.0, %v5775_v59 }
 0x4e2   :  { %v5779_v63 = vpop.eup %5778  ;;  %5788 = vrcp.f32 %v4277_v60  ;;  %v4283_v0 = vadd.f32 1.0, %v5777_v61 }
 0x4e3   :  { %v5781_v1 = vpop.eup %5780  ;;  %5790 = vrcp.f32 %v4281_v62  ;;  %v4282_v4 = vadd.f32 1.0, %v5779_v63  ;;  %v2723_v62 = vsub.s32 4, %v6613_v50  ;;  %v2727_v63 = vsub.s32 5, %v6613_v50 }
 0x4e4   :  { %5792 = vrcp.f32 %v4283_v0  ;;  %v4284_v5 = vadd.f32 1.0, %v5781_v1 }
 0x4e5   :  { %5794 = vrcp.f32 %v4282_v4  ;;  %v2724_v0 = vrot.slane %v7550_v18, %v2723_v62  ;;  %v2728_v1 = vrot.slane %v7550_v18, %v2727_v63 }
 0x4e6   :  { %5796 = vrcp.f32 %v4284_v5 }
 0x4e9   :  { %v5783_v6 = vpop.eup %5782 }
 0x4ea   :  { %v5785_v7 = vpop.eup %5784  ;;  %v4302_v8 = vmax.f32 %v5783_v6, 0.0 }
 0x4eb   :  { %v5787_v9 = vpop.eup %5786  ;;  %v4304_v10 = vmax.f32 %v5785_v7, 0.0 }
 0x4ec   :  { %v5789_v11 = vpop.eup %5788  ;;  %v4316_v12 = vmin.f32 %v4302_v8, 1.0  ;;  %v4303_v15 = vmax.f32 %v5787_v9, 0.0  ;;  %v4901_v16 = vpop.f32.mrb[12].mxu0 }
 0x4ed   :  { %v5791_v17 = vpop.eup %5790  ;;  %v4318_v19 = vmin.f32 %v4304_v10, 1.0  ;;  %v4305_v20 = vmax.f32 %v5789_v11, 0.0  ;;  %v4902_v21 = vpop.f32.mrb[13].mxu0 }
 0x4ee   :  { %v5793_v22 = vpop.eup %5792  ;;  %4330 = vst [vmem:[%s7622_s10] sm:$0xff] %v4316_v12  ;;  %v4317_v23 = vmin.f32 %v4303_v15, 1.0  ;;  %v4309_v24 = vmax.f32 %v5791_v17, 0.0  ;;  %v4903_v2 = vadd.f32 %v4902_v21, %v4901_v16  ;;  %v4904_v25 = vpop.f32.mrb[14].mxu0 }
 0x4ef   :  { %v5795_v26 = vpop.eup %5794  ;;  %4332 = vst [vmem:[%s7622_s10 + $0x10] sm:$0xff] %v4318_v19  ;;  %v4319_v27 = vmin.f32 %v4305_v20, 1.0  ;;  %v4311_v28 = vmax.f32 %v5793_v22, 0.0  ;;  %v4905_v29 = vpop.f32.mrb[15].mxu0 }
 0x4f0   :  { %v5797_v30 = vpop.eup %5796  ;;  %4331 = vst [vmem:[%s7622_s10 + $0x8] sm:$0xff] %v4317_v23  ;;  %v4323_v31 = vmin.f32 %v4309_v24, 1.0  ;;  %v4310_v51 = vmax.f32 %v5795_v26, 0.0  ;;  %v4906_v32 = vadd.f32 %v4905_v29, %v4904_v25  ;;  %v4185_v38 = vadd.f32 %v4903_v2, %v2732_v36 }
 0x4f1   :  { %4333 = vst [vmem:[%s7622_s10 + $0x18] sm:$0xff] %v4319_v27  ;;  %v4325_v33 = vmin.f32 %v4311_v28, 1.0  ;;  %v4312_v52 = vmax.f32 %v5797_v30, 0.0 }
 0x4f2   :  { %4337 = vst [vmem:[%s7622_s10 + $0x38] sm:$0xff] %v4323_v31  ;;  %v4324_v34 = vmin.f32 %v4310_v51, 1.0  ;;  %v4188_v42 = vadd.f32 %v4906_v32, %v2732_v36 }
 0x4f3   :  { %4339 = vst [vmem:[%s7622_s10 + $0x48] sm:$0xff] %v4325_v33  ;;  %v4326_v35 = vmin.f32 %v4312_v52, 1.0 }
 0x4f4   :  { %4338 = vst [vmem:[%s7622_s10 + $0x40] sm:$0xff] %v4324_v34 }
 0x4f5   :  { %4340 = vst [vmem:[%s7622_s10 + $0x50] sm:$0xff] %v4326_v35 }
 0x50c   :  { %v4923_v37 = vpop.f32.mrb[16].mxu0 }
 0x50d   :  { %v4924_v55 = vpop.f32.mrb[17].mxu0 }
 0x50e   :  { %v4925_v39 = vadd.f32 %v4924_v55, %v4923_v37  ;;  %v4926_v40 = vpop.f32.mrb[18].mxu0 }
 0x50f   :  { %v4927_v41 = vpop.f32.mrb[19].mxu0 }
 0x510   :  { %v4226_v43 = vadd.f32 %v4925_v39, %v4185_v38  ;;  %v4928_v44 = vadd.f32 %v4927_v41, %v4926_v40 }
 0x512   :  { %v4238_v45 = vsub.f32 0.0, %v4226_v43  ;;  %v4229_v46 = vadd.f32 %v4928_v44, %v4188_v42 }
 0x514   :  { %v4258_v14 = vmul.f32 1.442695, %v4238_v45  ;;  %v4245_v47 = vsub.f32 0.0, %v4229_v46 }
 0x516   :  { %5798 = vpow2.f32 %v4258_v14  ;;  %v4272_v48 = vmul.f32 1.442695, %v4245_v47 }
 0x518   :  { %5800 = vpow2.f32 %v4272_v48 }
 0x520   :  { %v5799_v13 = vpop.eup %5798 }
 0x521   :  { %v4280_v3 = vadd.f32 1.0, %v5799_v13 }
 0x522   :  { %v5801_v49 = vpop.eup %5800 }
 0x523   :  { %5802 = vrcp.f32 %v4280_v3  ;;  %v4287_v53 = vadd.f32 1.0, %v5801_v49 }
 0x525   :  { %5804 = vrcp.f32 %v4287_v53 }
 0x52d   :  { %v5803_v56 = vpop.eup %5802 }
 0x52e   :  { %v4308_v57 = vmax.f32 %v5803_v56, 0.0 }
 0x52f   :  { %v5805_v58 = vpop.eup %5804 }
 0x530   :  { %v4322_v59 = vmin.f32 %v4308_v57, 1.0  ;;  %v4315_v60 = vmax.f32 %v5805_v58, 0.0 }
 0x532   :  { %4336 = vst.msk [vmem:[%s7622_s10 + $0x30] sm:$0xff] %vm1280_vm0, %v4322_v59  ;;  %v4329_v61 = vmin.f32 %v4315_v60, 1.0 }
 0x534   :  { %4343 = vst.msk [vmem:[%s7622_s10 + $0x68] sm:$0xff] %vm1280_vm0, %v4329_v61 }
 0x54b   :  { %v4141_v4 = vpop.f32.mrb[16].mxu1 }
 0x54c   :  { %v4949_v5 = vadd.f32 %v4141_v4, %v2724_v0  ;;  %v4143_v6 = vpop.f32.mrb[17].mxu1 }
 0x54d   :  { %v4950_v7 = vadd.f32 %v4143_v6, %v2728_v1  ;;  %v4145_v8 = vpop.f32.mrb[18].mxu1 }
 0x54e   :  { %v4236_v9 = vsub.f32 0.0, %v4949_v5  ;;  %v4951_v10 = vadd.f32 %v4145_v8, %v2724_v0  ;;  %v4147_v11 = vpop.f32.mrb[19].mxu1 }
 0x54f   :  { %v4237_v12 = vsub.f32 0.0, %v4950_v7  ;;  %v4952_v15 = vadd.f32 %v4147_v11, %v2728_v1 }
 0x550   :  { %v4254_v16 = vmul.f32 1.442695, %v4236_v9  ;;  %v4243_v17 = vsub.f32 0.0, %v4951_v10 }
 0x551   :  { %v4256_v19 = vmul.f32 1.442695, %v4237_v12  ;;  %v4244_v20 = vsub.f32 0.0, %v4952_v15 }
 0x552   :  { %5806 = vpow2.f32 %v4254_v16  ;;  %v4268_v50 = vmul.f32 1.442695, %v4243_v17 }
 0x553   :  { %5808 = vpow2.f32 %v4256_v19  ;;  %v4270_v21 = vmul.f32 1.442695, %v4244_v20 }
 0x554   :  { %5810 = vpow2.f32 %v4268_v50 }
 0x555   :  { %5812 = vpow2.f32 %v4270_v21 }
 0x55c   :  { %v5807_v18 = vpop.eup %5806 }
 0x55d   :  { %v5809_v22 = vpop.eup %5808  ;;  %v4278_v23 = vadd.f32 1.0, %v5807_v18 }
 0x55e   :  { %v5811_v24 = vpop.eup %5810  ;;  %v4279_v2 = vadd.f32 1.0, %v5809_v22 }
 0x55f   :  { %v5813_v25 = vpop.eup %5812  ;;  %5814 = vrcp.f32 %v4278_v23  ;;  %v4285_v26 = vadd.f32 1.0, %v5811_v24 }
 0x560   :  { %5816 = vrcp.f32 %v4279_v2  ;;  %v4286_v27 = vadd.f32 1.0, %v5813_v25 }
 0x561   :  { %5818 = vrcp.f32 %v4285_v26 }
 0x562   :  { %5820 = vrcp.f32 %v4286_v27 }
 0x569   :  { %v5815_v28 = vpop.eup %5814 }
 0x56a   :  { %v5817_v29 = vpop.eup %5816  ;;  %v4306_v30 = vmax.f32 %v5815_v28, 0.0 }
 0x56b   :  { %v5819_v31 = vpop.eup %5818  ;;  %v4307_v51 = vmax.f32 %v5817_v29, 0.0 }
 0x56c   :  { %v5821_v32 = vpop.eup %5820  ;;  %v4320_v33 = vmin.f32 %v4306_v30, 1.0  ;;  %v4313_v52 = vmax.f32 %v5819_v31, 0.0 }
 0x56d   :  { %v4321_v34 = vmin.f32 %v4307_v51, 1.0  ;;  %v4314_v35 = vmax.f32 %v5821_v32, 0.0 }
 0x56e   :  { %4334 = vst [vmem:[%s7622_s10 + $0x20] sm:$0xff] %v4320_v33  ;;  %v4327_v54 = vmin.f32 %v4313_v52, 1.0 }
 0x56f   :  { %4335 = vst [vmem:[%s7622_s10 + $0x28] sm:$0xff] %v4321_v34  ;;  %v4328_v36 = vmin.f32 %v4314_v35, 1.0 }
 0x570   :  { %4341 = vst [vmem:[%s7622_s10 + $0x58] sm:$0xff] %v4327_v54 }
 0x571   :  { %4342 = vst [vmem:[%s7622_s10 + $0x60] sm:$0xff] %v4328_v36 }

</bundles_post_ra>
